<compile_context>
chip_gen: v7x
topology: tpu7x:2x2x1
jax: 0.10.0
libtpu: 0.0.40
codegen_flags: <defaults>
</compile_context>

<pallas_src>
import jax
import jax.numpy as jnp
import numpy as np
from jax.experimental import pallas as pl
from jax.experimental.pallas import tpu as pltpu

# ----------------------------- small config ---------------------------------
B = 2                      # batch
C = 3                      # image channels
IMG = 32                   # spatial size
PATCH = 16                 # patch size  -> (32/16)^2 = 4 patches
N_PATCH = (IMG // PATCH) ** 2
SEQ = N_PATCH + 1          # +1 CLS token (= 5)
SEQ_PAD = 8                # sublane-aligned tokens per image (rows >= SEQ are padding)
D = 32                     # embed dim  (1024 in vit_large, shrunk here)
HEADS = 4
HEAD_DIM = D // HEADS
MLP = 4 * D                # mlp_ratio = 4
DEPTH = 2                  # 24 in vit_large, shrunk here
EPS = 1e-6                 # timm ViT LayerNorm eps
PATCH_DIM = C * PATCH * PATCH
BS_PAD = B * SEQ_PAD       # flattened (padded) token rows per matmul
NEG_INF = -1e9

BLK_KEYS = ["ln1_g", "ln1_b", "wqkv", "bqkv", "wproj", "bproj",
            "ln2_g", "ln2_b", "wfc1", "bfc1", "wfc2", "bfc2"]


# ----------------------------- shared math -----------------------------------
def _layernorm(x, g, b):
    mu = jnp.mean(x, axis=-1, keepdims=True)
    xc = x - mu
    var = jnp.mean(xc * xc, axis=-1, keepdims=True)
    return xc * jax.lax.rsqrt(var + EPS) * g + b


def _gelu(x):
    # TODO(synk): exact erf-GELU (timm) not used; tanh approximation instead.
    c = 0.7978845608028654  # sqrt(2/pi)
    return 0.5 * x * (1.0 + jnp.tanh(c * (x + 0.044715 * x * x * x)))


# ----------------------------- Pallas kernel ----------------------------------
def _vit_block_kernel(xp_ref, w_pe_ref, addend_ref,
                      ln1_g_ref, ln1_b_ref, wqkv_ref, bqkv_ref,
                      wproj_ref, bproj_ref, ln2_g_ref, ln2_b_ref,
                      wfc1_ref, bfc1_ref, wfc2_ref, bfc2_ref,
                      o_ref, x_ref):
    """Grid step l = transformer Block l; x_ref (VMEM scratch) carries the token slab."""
    l = pl.program_id(0)

    # ---- step 0: patch embed + cls/pos assembly (one matmul + one full-slab add) ----
    @pl.when(l == 0)
    def _():
        x_ref[...] = (jnp.dot(xp_ref[...], w_pe_ref[...],
                              preferred_element_type=jnp.float32)
                      + addend_ref[...])                       # [B*SEQ_PAD, D] f32

    x = x_ref[...]                                             # registers, f32

    # additive key mask for sublane padding rows (key index >= SEQ)
    key_idx = jax.lax.broadcasted_iota(jnp.int32, (1, SEQ_PAD), 1)
    key_mask = jnp.where(key_idx < SEQ, 0.0, NEG_INF).astype(jnp.float32)

    # per-layer weights (squeezed layer dim by BlockSpec); biases are (1, X) f32
    ln1_g, ln1_b = ln1_g_ref[...], ln1_b_ref[...]
    ln2_g, ln2_b = ln2_g_ref[...], ln2_b_ref[...]
    bqkv, bproj = bqkv_ref[...], bproj_ref[...]
    bfc1, bfc2 = bfc1_ref[...], bfc2_ref[...]

    scale = HEAD_DIM ** -0.5

    # ---------------- attention (qkv for the whole padded batch at once) -------------
    h = _layernorm(x, ln1_g, ln1_b)
    qkv = (jnp.dot(h.astype(jnp.bfloat16), wqkv_ref[...],
                   preferred_element_type=jnp.float32) + bqkv)   # [BS_PAD, 3D] f32
    qkv3 = qkv.reshape(B, SEQ_PAD, 3 * D)

    head_outs = []
    for hd in range(HEADS):                                      # static 4-way unroll
        qs = slice(hd * HEAD_DIM, (hd + 1) * HEAD_DIM)
        ks = slice(D + hd * HEAD_DIM, D + (hd + 1) * HEAD_DIM)
        vs = slice(2 * D + hd * HEAD_DIM, 2 * D + (hd + 1) * HEAD_DIM)
        qh = qkv3[:, :, qs] * scale                              # [B, Sp, hd]
        kh = qkv3[:, :, ks]
        vh = qkv3[:, :, vs]
        s = jnp.einsum('bsd,btd->bst', qh, kh,
                       preferred_element_type=jnp.float32)       # [B, Sp, Sp]
        s = s + key_mask                                         # mask padded keys
        s = s - jnp.max(s, axis=-1, keepdims=True)
        p = jnp.exp(s)
        # divide -> EUP via approximate reciprocal (free slot); ~1e-3-level deviation
        p = p * pl.reciprocal(jnp.sum(p, axis=-1, keepdims=True), approx=True)
        head_outs.append(jnp.einsum('bst,btd->bsd', p, vh,
                                    preferred_element_type=jnp.float32))
    attn = jnp.concatenate(head_outs, axis=-1).reshape(BS_PAD, D)  # heads -> lane dim
    x = (x + jnp.dot(attn.astype(jnp.bfloat16), wproj_ref[...],
                     preferred_element_type=jnp.float32) + bproj)

    # ---------------- mlp ----------------
    h2 = _layernorm(x, ln2_g, ln2_b)
    m = (jnp.dot(h2.astype(jnp.bfloat16), wfc1_ref[...],
                 preferred_element_type=jnp.float32) + bfc1)
    m = _gelu(m)                                                 # f32 elementwise
    x = (x + jnp.dot(m.astype(jnp.bfloat16), wfc2_ref[...],
                     preferred_element_type=jnp.float32) + bfc2)

    x_ref[...] = x                                               # carry to next layer

    # ---- hooked feature: CLS token of the LAST Block's output (single (B,D) store) --
    @pl.when(l == DEPTH - 1)
    def _():
        o_ref[...] = x.reshape(B, SEQ_PAD, D)[:, 0, :]
    # NOTE: vit.norm / head run after the hooked feature in PyTorch, so they do not
    # affect the returned value and are not computed here.


# ----------------------------- wrappers ---------------------------------------
def _im2col(x_nchw):
    hp = IMG // PATCH
    x = x_nchw.reshape(B, C, hp, PATCH, hp, PATCH)
    x = x.transpose(0, 2, 4, 1, 3, 5)              # [B, hp, wp, C, P, P]
    return x.reshape(B, N_PATCH, PATCH_DIM)        # (c, kh, kw) order == conv weight flatten


_FLOPS = (2 * BS_PAD * PATCH_DIM * D
          + DEPTH * (2 * BS_PAD * D * (3 * D)          # qkv
                     + 4 * B * HEADS * SEQ_PAD * SEQ_PAD * HEAD_DIM   # attn matmuls
                     + 2 * BS_PAD * D * D               # proj
                     + 4 * BS_PAD * D * MLP))           # fc1 + fc2
_TRANSCENDENTALS = DEPTH * (B * HEADS * SEQ_PAD * SEQ_PAD + BS_PAD * MLP)


@jax.jit
def vit_extractor_forward(x_nchw, params):
    """Equivalent of ViTExtractor.forward: returns last Block output's CLS token."""
    # zero-padded im2col slab: per image, row 0 (CLS) and rows SEQ..7 are zeros so the
    # patch-embed matmul leaves them zero; bf16 for the MXU.
    xp = _im2col(x_nchw)
    xp_pad = jnp.zeros((B, SEQ_PAD, PATCH_DIM), jnp.float32)
    xp_pad = xp_pad.at[:, 1:1 + N_PATCH, :].set(xp)
    xp_pad = xp_pad.reshape(BS_PAD, PATCH_DIM).astype(jnp.bfloat16)

    # additive template: row 0 = cls + pos[0]; rows 1..N_PATCH = pos[1:] + conv bias;
    # padding rows = 0.  Assembly in-kernel becomes one full-slab add.
    addend = jnp.zeros((B, SEQ_PAD, D), jnp.float32)
    addend = addend.at[:, 0, :].set(params["cls"][0] + params["pos"][0])
    addend = addend.at[:, 1:1 + N_PATCH, :].set(params["pos"][1:] + params["b_pe"])
    addend = addend.reshape(BS_PAD, D)

    all_args = [xp_pad, params["w_pe"], addend] + [params[k] for k in BLK_KEYS]
    bytes_accessed = (sum(int(np.prod(a.shape)) * a.dtype.itemsize for a in all_args)
                      + B * D * 4)

    per_layer = lambda shape: pl.BlockSpec(shape, lambda l: (l, 0, 0))
    const2d = lambda shape: pl.BlockSpec(shape, lambda l: (0, 0))

    grid_spec = pltpu.PrefetchScalarGridSpec(
        num_scalar_prefetch=0,
        grid=(DEPTH,),
        in_specs=[
            const2d((BS_PAD, PATCH_DIM)),            # xp_pad   (fetched once)
            const2d((PATCH_DIM, D)),                 # w_pe
            const2d((BS_PAD, D)),                    # addend
            per_layer((None, 1, D)),                 # ln1_g   (layer dim squeezed,
            per_layer((None, 1, D)),                 # ln1_b    double-buffered per step)
            per_layer((None, D, 3 * D)),             # wqkv
            per_layer((None, 1, 3 * D)),             # bqkv
            per_layer((None, D, D)),                 # wproj
            per_layer((None, 1, D)),                 # bproj
            per_layer((None, 1, D)),                 # ln2_g
            per_layer((None, 1, D)),                 # ln2_b
            per_layer((None, D, MLP)),               # wfc1
            per_layer((None, 1, MLP)),               # bfc1
            per_layer((None, MLP, D)),               # wfc2
            per_layer((None, 1, D)),                 # bfc2
        ],
        out_specs=pl.BlockSpec((B, D), lambda l: (0, 0)),
        scratch_shapes=[pltpu.VMEM((BS_PAD, D), jnp.float32)],   # token slab carry
    )

    return pl.pallas_call(
        _vit_block_kernel,
        out_shape=jax.ShapeDtypeStruct((B, D), jnp.float32),
        grid_spec=grid_spec,
        compiler_params=pltpu.CompilerParams(
            dimension_semantics=("arbitrary",),       # layer axis is a sequential carry
            vmem_limit_bytes=32 * 1024 * 1024,
        ),
        cost_estimate=pl.CostEstimate(flops=_FLOPS,
                                      transcendentals=_TRANSCENDENTALS,
                                      bytes_accessed=bytes_accessed),
    )(*all_args)


# ----------------------------- params & reference ----------------------------
def init_params(key):
    ks = list(jax.random.split(key, 16))

    def nrm(k, shape, std=0.02, dtype=jnp.float32):
        return (std * jax.random.normal(k, shape)).astype(dtype)

    return {
        # matmul weights stored bf16 (MXU inputs); biases / LN / cls / pos stay f32.
        "w_pe": nrm(ks[0], (PATCH_DIM, D), dtype=jnp.bfloat16),
        "b_pe": nrm(ks[1], (1, D)),
        "cls": nrm(ks[2], (1, D)),
        "pos": nrm(ks[3], (SEQ, D)),
        "ln1_g": jnp.ones((DEPTH, 1, D), jnp.float32),
        "ln1_b": nrm(ks[4], (DEPTH, 1, D)),
        "wqkv": nrm(ks[5], (DEPTH, D, 3 * D), dtype=jnp.bfloat16),
        "bqkv": nrm(ks[6], (DEPTH, 1, 3 * D)),
        "wproj": nrm(ks[7], (DEPTH, D, D), dtype=jnp.bfloat16),
        "bproj": nrm(ks[8], (DEPTH, 1, D)),
        "ln2_g": jnp.ones((DEPTH, 1, D), jnp.float32),
        "ln2_b": nrm(ks[9], (DEPTH, 1, D)),
        "wfc1": nrm(ks[10], (DEPTH, D, MLP), dtype=jnp.bfloat16),
        "bfc1": nrm(ks[11], (DEPTH, 1, MLP)),
        "wfc2": nrm(ks[12], (DEPTH, MLP, D), dtype=jnp.bfloat16),
        "bfc2": nrm(ks[13], (DEPTH, 1, D)),
    }


def reference_forward(x_nchw, p):
    """Pure-JAX f32 reference of the same forward (for a sanity check)."""
    f32 = lambda a: a.astype(jnp.float32)
    tok = _im2col(x_nchw) @ f32(p["w_pe"]) + p["b_pe"]
    cls = jnp.broadcast_to(p["cls"][None], (B, 1, D))
    h = jnp.concatenate([cls, tok], axis=1) + p["pos"][None]
    scale = HEAD_DIM ** -0.5
    for l in range(DEPTH):
        y = _layernorm(h, p["ln1_g"][l], p["ln1_b"][l])
        qkv = y @ f32(p["wqkv"][l]) + p["bqkv"][l]
        q = qkv[..., :D].reshape(B, SEQ, HEADS, HEAD_DIM)
        k = qkv[..., D:2 * D].reshape(B, SEQ, HEADS, HEAD_DIM)
        v = qkv[..., 2 * D:].reshape(B, SEQ, HEADS, HEAD_DIM)
        s = jnp.einsum('bqhd,bkhd->bhqk', q, k) * scale
        a = jax.nn.softmax(s, axis=-1)
        o = jnp.einsum('bhqk,bkhd->bqhd', a, v).reshape(B, SEQ, D)
        h = h + o @ f32(p["wproj"][l]) + p["bproj"][l]
        y2 = _layernorm(h, p["ln2_g"][l], p["ln2_b"][l])
        h = h + _gelu(y2 @ f32(p["wfc1"][l]) + p["bfc1"][l]) @ f32(p["wfc2"][l]) + p["bfc2"][l]
    return h[:, 0]


# ----------------------------- main -------------------------------------------
if __name__ == "__main__":
    key = jax.random.PRNGKey(0)
    kx, kp = jax.random.split(key)
    x = jax.random.normal(kx, (B, C, IMG, IMG), dtype=jnp.float32)  # NCHW
    params = init_params(kp)

    feats = vit_extractor_forward(x, params)
    feats = jax.block_until_ready(feats)
    assert feats.shape == (B, D), feats.shape

    ref = reference_forward(x, params)
    np.testing.assert_allclose(np.asarray(feats), np.asarray(ref),
                               rtol=5e-2, atol=5e-2)
    print("KERNEL_OK")
</pallas_src>

<mosaic_0001>
module attributes {stable_mosaic.version = 11 : i64} {
  func.func @_vit_block_kernel(%arg0: i32, %arg1: memref<16x768xbf16, #tpu.memory_space<vmem>>, %arg2: memref<768x32xbf16, #tpu.memory_space<vmem>>, %arg3: memref<16x32xf32, #tpu.memory_space<vmem>>, %arg4: memref<1x1x32xf32, #tpu.memory_space<vmem>>, %arg5: memref<1x1x32xf32, #tpu.memory_space<vmem>>, %arg6: memref<1x32x96xbf16, #tpu.memory_space<vmem>>, %arg7: memref<1x1x96xf32, #tpu.memory_space<vmem>>, %arg8: memref<1x32x32xbf16, #tpu.memory_space<vmem>>, %arg9: memref<1x1x32xf32, #tpu.memory_space<vmem>>, %arg10: memref<1x1x32xf32, #tpu.memory_space<vmem>>, %arg11: memref<1x1x32xf32, #tpu.memory_space<vmem>>, %arg12: memref<1x32x128xbf16, #tpu.memory_space<vmem>>, %arg13: memref<1x1x128xf32, #tpu.memory_space<vmem>>, %arg14: memref<1x128x32xbf16, #tpu.memory_space<vmem>>, %arg15: memref<1x1x32xf32, #tpu.memory_space<vmem>>, %arg16: memref<2x32xf32, #tpu.memory_space<vmem>>, %arg17: memref<16x32xf32, #tpu.memory_space<vmem>>) attributes {dimension_semantics = [#tpu.dimension_semantics<arbitrary>], iteration_bounds = array<i64: 2>, scalar_prefetch = 0 : i64, scratch_operands = 1 : i64, tpu.core_type = #tpu.core_type<tc>, window_params = [{pipeline_mode = #tpu.pipeline_mode<synchronous>, transform_indices = @transform_0, window_bounds = array<i64: 16, 768>}, {pipeline_mode = #tpu.pipeline_mode<synchronous>, transform_indices = @transform_1, window_bounds = array<i64: 768, 32>}, {pipeline_mode = #tpu.pipeline_mode<synchronous>, transform_indices = @transform_2, window_bounds = array<i64: 16, 32>}, {transform_indices = @transform_3, window_bounds = array<i64: 1, 1, 32>}, {transform_indices = @transform_4, window_bounds = array<i64: 1, 1, 32>}, {transform_indices = @transform_5, window_bounds = array<i64: 1, 32, 96>}, {transform_indices = @transform_6, window_bounds = array<i64: 1, 1, 96>}, {transform_indices = @transform_7, window_bounds = array<i64: 1, 32, 32>}, {transform_indices = @transform_8, window_bounds = array<i64: 1, 1, 32>}, {transform_indices = @transform_9, window_bounds = array<i64: 1, 1, 32>}, {transform_indices = @transform_10, window_bounds = array<i64: 1, 1, 32>}, {transform_indices = @transform_11, window_bounds = array<i64: 1, 32, 128>}, {transform_indices = @transform_12, window_bounds = array<i64: 1, 1, 128>}, {transform_indices = @transform_13, window_bounds = array<i64: 1, 128, 32>}, {transform_indices = @transform_14, window_bounds = array<i64: 1, 1, 32>}, {pipeline_mode = #tpu.pipeline_mode<synchronous>, transform_indices = @transform_15, window_bounds = array<i64: 2, 32>}]} {
    %c0_i32 = arith.constant 0 : i32
    %0 = arith.cmpi eq, %arg0, %c0_i32 : i32
    %1 = arith.extui %0 : i1 to i32
    %c0_i32_0 = arith.constant 0 : i32
    %2 = arith.cmpi ne, %1, %c0_i32_0 : i32
    scf.if %2 {
      %c0_80 = arith.constant 0 : index
      %c0_81 = arith.constant 0 : index
      %192 = vector.load %arg1[%c0_80, %c0_81] : memref<16x768xbf16, #tpu.memory_space<vmem>>, vector<16x768xbf16>
      %c0_82 = arith.constant 0 : index
      %c0_83 = arith.constant 0 : index
      %193 = vector.load %arg2[%c0_82, %c0_83] : memref<768x32xbf16, #tpu.memory_space<vmem>>, vector<768x32xbf16>
      %cst_84 = arith.constant dense<0.000000e+00> : vector<16x32xf32>
      %194 = tpu.matmul %192, %193, %cst_84 {dimension_numbers = #tpu.dot_dimension_numbers<[1], [0], [0], [1], [0, 0, 1, 1], [], []>} : vector<16x768xbf16>, vector<768x32xbf16>, vector<16x32xf32> -> vector<16x32xf32>
      %c0_85 = arith.constant 0 : index
      %c0_86 = arith.constant 0 : index
      %195 = vector.load %arg3[%c0_85, %c0_86] : memref<16x32xf32, #tpu.memory_space<vmem>>, vector<16x32xf32>
      %196 = arith.addf %194, %195 : vector<16x32xf32>
      %c0_87 = arith.constant 0 : index
      %c0_88 = arith.constant 0 : index
      %197 = vector.load %arg17[%c0_87, %c0_88] : memref<16x32xf32, #tpu.memory_space<vmem>>, vector<16x32xf32>
      tpu.vector_store %arg17[%c0_87, %c0_88], %196 {strides = array<i32>} : memref<16x32xf32, #tpu.memory_space<vmem>>, vector<16x32xf32>,
    } else {
    }
    %c0 = arith.constant 0 : index
    %c0_1 = arith.constant 0 : index
    %3 = vector.load %arg17[%c0, %c0_1] : memref<16x32xf32, #tpu.memory_space<vmem>>, vector<16x32xf32>
    %4 = tpu.iota {dimensions = array<i32: 1>} : vector<1x8xi32>
    %c5_i32 = arith.constant 5 : i32
    %5 = vector.broadcast %c5_i32 : i32 to vector<1x8xi32>
    %6 = arith.cmpi slt, %4, %5 : vector<1x8xi32>
    %cst = arith.constant 0.000000e+00 : f32
    %cst_2 = arith.constant -1.000000e+09 : f32
    %7 = vector.broadcast %cst : f32 to vector<1x8xf32>
    %8 = vector.broadcast %cst_2 : f32 to vector<1x8xf32>
    %9 = arith.select %6, %7, %8 : vector<1x8xi1>, vector<1x8xf32>
    %c0_3 = arith.constant 0 : index
    %c0_4 = arith.constant 0 : index
    %c0_5 = arith.constant 0 : index
    %10 = vector.load %arg4[%c0_3, %c0_4, %c0_5] : memref<1x1x32xf32, #tpu.memory_space<vmem>>, vector<1x1x32xf32>
    %11 = vector.shape_cast %10 : vector<1x1x32xf32> to vector<1x32xf32>
    %c0_6 = arith.constant 0 : index
    %c0_7 = arith.constant 0 : index
    %c0_8 = arith.constant 0 : index
    %12 = vector.load %arg5[%c0_6, %c0_7, %c0_8] : memref<1x1x32xf32, #tpu.memory_space<vmem>>, vector<1x1x32xf32>
    %13 = vector.shape_cast %12 : vector<1x1x32xf32> to vector<1x32xf32>
    %c0_9 = arith.constant 0 : index
    %c0_10 = arith.constant 0 : index
    %c0_11 = arith.constant 0 : index
    %14 = vector.load %arg10[%c0_9, %c0_10, %c0_11] : memref<1x1x32xf32, #tpu.memory_space<vmem>>, vector<1x1x32xf32>
    %15 = vector.shape_cast %14 : vector<1x1x32xf32> to vector<1x32xf32>
    %c0_12 = arith.constant 0 : index
    %c0_13 = arith.constant 0 : index
    %c0_14 = arith.constant 0 : index
    %16 = vector.load %arg11[%c0_12, %c0_13, %c0_14] : memref<1x1x32xf32, #tpu.memory_space<vmem>>, vector<1x1x32xf32>
    %17 = vector.shape_cast %16 : vector<1x1x32xf32> to vector<1x32xf32>
    %c0_15 = arith.constant 0 : index
    %c0_16 = arith.constant 0 : index
    %c0_17 = arith.constant 0 : index
    %18 = vector.load %arg7[%c0_15, %c0_16, %c0_17] : memref<1x1x96xf32, #tpu.memory_space<vmem>>, vector<1x1x96xf32>
    %19 = vector.shape_cast %18 : vector<1x1x96xf32> to vector<1x96xf32>
    %c0_18 = arith.constant 0 : index
    %c0_19 = arith.constant 0 : index
    %c0_20 = arith.constant 0 : index
    %20 = vector.load %arg9[%c0_18, %c0_19, %c0_20] : memref<1x1x32xf32, #tpu.memory_space<vmem>>, vector<1x1x32xf32>
    %21 = vector.shape_cast %20 : vector<1x1x32xf32> to vector<1x32xf32>
    %c0_21 = arith.constant 0 : index
    %c0_22 = arith.constant 0 : index
    %c0_23 = arith.constant 0 : index
    %22 = vector.load %arg13[%c0_21, %c0_22, %c0_23] : memref<1x1x128xf32, #tpu.memory_space<vmem>>, vector<1x1x128xf32>
    %23 = vector.shape_cast %22 : vector<1x1x128xf32> to vector<1x128xf32>
    %c0_24 = arith.constant 0 : index
    %c0_25 = arith.constant 0 : index
    %c0_26 = arith.constant 0 : index
    %24 = vector.load %arg15[%c0_24, %c0_25, %c0_26] : memref<1x1x32xf32, #tpu.memory_space<vmem>>, vector<1x1x32xf32>
    %25 = vector.shape_cast %24 : vector<1x1x32xf32> to vector<1x32xf32>
    %cst_27 = arith.constant dense<0.000000e+00> : vector<16xf32>
    %26 = vector.multi_reduction <add>, %3, %cst_27 [1] : vector<16x32xf32> to vector<16xf32>
    %27 = vector.shape_cast %26 : vector<16xf32> to vector<16x1xf32>
    %cst_28 = arith.constant 3.200000e+01 : f32
    %28 = vector.broadcast %cst_28 : f32 to vector<16x1xf32>
    %29 = arith.divf %27, %28 : vector<16x1xf32>
    %30 = vector.broadcast %29 : vector<16x1xf32> to vector<16x32xf32>
    %31 = arith.subf %3, %30 : vector<16x32xf32>
    %32 = arith.mulf %31, %31 : vector<16x32xf32>
    %cst_29 = arith.constant dense<0.000000e+00> : vector<16xf32>
    %33 = vector.multi_reduction <add>, %32, %cst_29 [1] : vector<16x32xf32> to vector<16xf32>
    %34 = vector.shape_cast %33 : vector<16xf32> to vector<16x1xf32>
    %cst_30 = arith.constant 3.200000e+01 : f32
    %35 = vector.broadcast %cst_30 : f32 to vector<16x1xf32>
    %36 = arith.divf %34, %35 : vector<16x1xf32>
    %cst_31 = arith.constant 9.99999997E-7 : f32
    %37 = vector.broadcast %cst_31 : f32 to vector<16x1xf32>
    %38 = arith.addf %36, %37 : vector<16x1xf32>
    %39 = math.rsqrt %38 : vector<16x1xf32>
    %40 = vector.broadcast %39 : vector<16x1xf32> to vector<16x32xf32>
    %41 = arith.mulf %31, %40 : vector<16x32xf32>
    %42 = vector.broadcast %11 : vector<1x32xf32> to vector<16x32xf32>
    %43 = arith.mulf %41, %42 : vector<16x32xf32>
    %44 = vector.broadcast %13 : vector<1x32xf32> to vector<16x32xf32>
    %45 = arith.addf %43, %44 : vector<16x32xf32>
    %46 = arith.truncf %45 : vector<16x32xf32> to vector<16x32xbf16>
    %c0_32 = arith.constant 0 : index
    %c0_33 = arith.constant 0 : index
    %c0_34 = arith.constant 0 : index
    %47 = vector.load %arg6[%c0_32, %c0_33, %c0_34] : memref<1x32x96xbf16, #tpu.memory_space<vmem>>, vector<1x32x96xbf16>
    %48 = vector.shape_cast %47 : vector<1x32x96xbf16> to vector<32x96xbf16>
    %cst_35 = arith.constant dense<0.000000e+00> : vector<16x96xf32>
    %49 = tpu.matmul %46, %48, %cst_35 {dimension_numbers = #tpu.dot_dimension_numbers<[1], [0], [0], [1], [0, 0, 1, 1], [], []>} : vector<16x32xbf16>, vector<32x96xbf16>, vector<16x96xf32> -> vector<16x96xf32>
    %50 = vector.broadcast %19 : vector<1x96xf32> to vector<16x96xf32>
    %51 = arith.addf %49, %50 : vector<16x96xf32>
    %52 = vector.shape_cast %51 : vector<16x96xf32> to vector<2x8x96xf32>
    %53 = vector.extract_strided_slice %52 {offsets = [0, 0, 0], sizes = [2, 8, 8], strides = [1, 1, 1]} : vector<2x8x96xf32> to vector<2x8x8xf32>
    %cst_36 = arith.constant 0.353553385 : f32
    %54 = vector.broadcast %cst_36 : f32 to vector<2x8x8xf32>
    %55 = arith.mulf %53, %54 : vector<2x8x8xf32>
    %56 = vector.extract_strided_slice %52 {offsets = [0, 0, 32], sizes = [2, 8, 8], strides = [1, 1, 1]} : vector<2x8x96xf32> to vector<2x8x8xf32>
    %57 = vector.extract_strided_slice %52 {offsets = [0, 0, 64], sizes = [2, 8, 8], strides = [1, 1, 1]} : vector<2x8x96xf32> to vector<2x8x8xf32>
    "tpu.trace_start"() <{level = 10 : i32, message = "bsd,btd->bst"}> : () -> ()
    %cst_37 = arith.constant dense<0.000000e+00> : vector<2x8x8xf32>
    %58 = tpu.matmul %55, %56, %cst_37 {dimension_numbers = #tpu.dot_dimension_numbers<[2], [2], [1], [1], [0, 0, 0, 1, 1, 1], [0], [0]>} : vector<2x8x8xf32>, vector<2x8x8xf32>, vector<2x8x8xf32> -> vector<2x8x8xf32>
    "tpu.trace_stop"() : () -> ()
    %59 = vector.shape_cast %9 : vector<1x8xf32> to vector<1x1x8xf32>
    %60 = vector.broadcast %59 : vector<1x1x8xf32> to vector<2x8x8xf32>
    %61 = arith.addf %58, %60 : vector<2x8x8xf32>
    %cst_38 = arith.constant dense<0xFF800000> : vector<2x8xf32>
    %62 = vector.multi_reduction <maximumf>, %61, %cst_38 [2] : vector<2x8x8xf32> to vector<2x8xf32>
    %63 = vector.shape_cast %62 : vector<2x8xf32> to vector<2x8x1xf32>
    %64 = vector.broadcast %63 : vector<2x8x1xf32> to vector<2x8x8xf32>
    %65 = arith.subf %61, %64 : vector<2x8x8xf32>
    %66 = math.exp %65 : vector<2x8x8xf32>
    %cst_39 = arith.constant dense<0.000000e+00> : vector<2x8xf32>
    %67 = vector.multi_reduction <add>, %66, %cst_39 [2] : vector<2x8x8xf32> to vector<2x8xf32>
    %68 = vector.shape_cast %67 : vector<2x8xf32> to vector<2x8x1xf32>
    %69 = tpu.reciprocal %68 {approx = true} : vector<2x8x1xf32> -> vector<2x8x1xf32>
    %70 = vector.broadcast %69 : vector<2x8x1xf32> to vector<2x8x8xf32>
    %71 = arith.mulf %66, %70 : vector<2x8x8xf32>
    "tpu.trace_start"() <{level = 10 : i32, message = "bst,btd->bsd"}> : () -> ()
    %cst_40 = arith.constant dense<0.000000e+00> : vector<2x8x8xf32>
    %72 = tpu.matmul %71, %57, %cst_40 {dimension_numbers = #tpu.dot_dimension_numbers<[2], [1], [1], [2], [0, 0, 0, 1, 1, 2], [0], [0]>} : vector<2x8x8xf32>, vector<2x8x8xf32>, vector<2x8x8xf32> -> vector<2x8x8xf32>
    "tpu.trace_stop"() : () -> ()
    %73 = vector.extract_strided_slice %52 {offsets = [0, 0, 8], sizes = [2, 8, 8], strides = [1, 1, 1]} : vector<2x8x96xf32> to vector<2x8x8xf32>
    %cst_41 = arith.constant 0.353553385 : f32
    %74 = vector.broadcast %cst_41 : f32 to vector<2x8x8xf32>
    %75 = arith.mulf %73, %74 : vector<2x8x8xf32>
    %76 = vector.extract_strided_slice %52 {offsets = [0, 0, 40], sizes = [2, 8, 8], strides = [1, 1, 1]} : vector<2x8x96xf32> to vector<2x8x8xf32>
    %77 = vector.extract_strided_slice %52 {offsets = [0, 0, 72], sizes = [2, 8, 8], strides = [1, 1, 1]} : vector<2x8x96xf32> to vector<2x8x8xf32>
    "tpu.trace_start"() <{level = 10 : i32, message = "bsd,btd->bst"}> : () -> ()
    %cst_42 = arith.constant dense<0.000000e+00> : vector<2x8x8xf32>
    %78 = tpu.matmul %75, %76, %cst_42 {dimension_numbers = #tpu.dot_dimension_numbers<[2], [2], [1], [1], [0, 0, 0, 1, 1, 1], [0], [0]>} : vector<2x8x8xf32>, vector<2x8x8xf32>, vector<2x8x8xf32> -> vector<2x8x8xf32>
    "tpu.trace_stop"() : () -> ()
    %79 = vector.shape_cast %9 : vector<1x8xf32> to vector<1x1x8xf32>
    %80 = vector.broadcast %79 : vector<1x1x8xf32> to vector<2x8x8xf32>
    %81 = arith.addf %78, %80 : vector<2x8x8xf32>
    %cst_43 = arith.constant dense<0xFF800000> : vector<2x8xf32>
    %82 = vector.multi_reduction <maximumf>, %81, %cst_43 [2] : vector<2x8x8xf32> to vector<2x8xf32>
    %83 = vector.shape_cast %82 : vector<2x8xf32> to vector<2x8x1xf32>
    %84 = vector.broadcast %83 : vector<2x8x1xf32> to vector<2x8x8xf32>
    %85 = arith.subf %81, %84 : vector<2x8x8xf32>
    %86 = math.exp %85 : vector<2x8x8xf32>
    %cst_44 = arith.constant dense<0.000000e+00> : vector<2x8xf32>
    %87 = vector.multi_reduction <add>, %86, %cst_44 [2] : vector<2x8x8xf32> to vector<2x8xf32>
    %88 = vector.shape_cast %87 : vector<2x8xf32> to vector<2x8x1xf32>
    %89 = tpu.reciprocal %88 {approx = true} : vector<2x8x1xf32> -> vector<2x8x1xf32>
    %90 = vector.broadcast %89 : vector<2x8x1xf32> to vector<2x8x8xf32>
    %91 = arith.mulf %86, %90 : vector<2x8x8xf32>
    "tpu.trace_start"() <{level = 10 : i32, message = "bst,btd->bsd"}> : () -> ()
    %cst_45 = arith.constant dense<0.000000e+00> : vector<2x8x8xf32>
    %92 = tpu.matmul %91, %77, %cst_45 {dimension_numbers = #tpu.dot_dimension_numbers<[2], [1], [1], [2], [0, 0, 0, 1, 1, 2], [0], [0]>} : vector<2x8x8xf32>, vector<2x8x8xf32>, vector<2x8x8xf32> -> vector<2x8x8xf32>
    "tpu.trace_stop"() : () -> ()
    %93 = vector.extract_strided_slice %52 {offsets = [0, 0, 16], sizes = [2, 8, 8], strides = [1, 1, 1]} : vector<2x8x96xf32> to vector<2x8x8xf32>
    %cst_46 = arith.constant 0.353553385 : f32
    %94 = vector.broadcast %cst_46 : f32 to vector<2x8x8xf32>
    %95 = arith.mulf %93, %94 : vector<2x8x8xf32>
    %96 = vector.extract_strided_slice %52 {offsets = [0, 0, 48], sizes = [2, 8, 8], strides = [1, 1, 1]} : vector<2x8x96xf32> to vector<2x8x8xf32>
    %97 = vector.extract_strided_slice %52 {offsets = [0, 0, 80], sizes = [2, 8, 8], strides = [1, 1, 1]} : vector<2x8x96xf32> to vector<2x8x8xf32>
    "tpu.trace_start"() <{level = 10 : i32, message = "bsd,btd->bst"}> : () -> ()
    %cst_47 = arith.constant dense<0.000000e+00> : vector<2x8x8xf32>
    %98 = tpu.matmul %95, %96, %cst_47 {dimension_numbers = #tpu.dot_dimension_numbers<[2], [2], [1], [1], [0, 0, 0, 1, 1, 1], [0], [0]>} : vector<2x8x8xf32>, vector<2x8x8xf32>, vector<2x8x8xf32> -> vector<2x8x8xf32>
    "tpu.trace_stop"() : () -> ()
    %99 = vector.shape_cast %9 : vector<1x8xf32> to vector<1x1x8xf32>
    %100 = vector.broadcast %99 : vector<1x1x8xf32> to vector<2x8x8xf32>
    %101 = arith.addf %98, %100 : vector<2x8x8xf32>
    %cst_48 = arith.constant dense<0xFF800000> : vector<2x8xf32>
    %102 = vector.multi_reduction <maximumf>, %101, %cst_48 [2] : vector<2x8x8xf32> to vector<2x8xf32>
    %103 = vector.shape_cast %102 : vector<2x8xf32> to vector<2x8x1xf32>
    %104 = vector.broadcast %103 : vector<2x8x1xf32> to vector<2x8x8xf32>
    %105 = arith.subf %101, %104 : vector<2x8x8xf32>
    %106 = math.exp %105 : vector<2x8x8xf32>
    %cst_49 = arith.constant dense<0.000000e+00> : vector<2x8xf32>
    %107 = vector.multi_reduction <add>, %106, %cst_49 [2] : vector<2x8x8xf32> to vector<2x8xf32>
    %108 = vector.shape_cast %107 : vector<2x8xf32> to vector<2x8x1xf32>
    %109 = tpu.reciprocal %108 {approx = true} : vector<2x8x1xf32> -> vector<2x8x1xf32>
    %110 = vector.broadcast %109 : vector<2x8x1xf32> to vector<2x8x8xf32>
    %111 = arith.mulf %106, %110 : vector<2x8x8xf32>
    "tpu.trace_start"() <{level = 10 : i32, message = "bst,btd->bsd"}> : () -> ()
    %cst_50 = arith.constant dense<0.000000e+00> : vector<2x8x8xf32>
    %112 = tpu.matmul %111, %97, %cst_50 {dimension_numbers = #tpu.dot_dimension_numbers<[2], [1], [1], [2], [0, 0, 0, 1, 1, 2], [0], [0]>} : vector<2x8x8xf32>, vector<2x8x8xf32>, vector<2x8x8xf32> -> vector<2x8x8xf32>
    "tpu.trace_stop"() : () -> ()
    %113 = vector.extract_strided_slice %52 {offsets = [0, 0, 24], sizes = [2, 8, 8], strides = [1, 1, 1]} : vector<2x8x96xf32> to vector<2x8x8xf32>
    %cst_51 = arith.constant 0.353553385 : f32
    %114 = vector.broadcast %cst_51 : f32 to vector<2x8x8xf32>
    %115 = arith.mulf %113, %114 : vector<2x8x8xf32>
    %116 = vector.extract_strided_slice %52 {offsets = [0, 0, 56], sizes = [2, 8, 8], strides = [1, 1, 1]} : vector<2x8x96xf32> to vector<2x8x8xf32>
    %117 = vector.extract_strided_slice %52 {offsets = [0, 0, 88], sizes = [2, 8, 8], strides = [1, 1, 1]} : vector<2x8x96xf32> to vector<2x8x8xf32>
    "tpu.trace_start"() <{level = 10 : i32, message = "bsd,btd->bst"}> : () -> ()
    %cst_52 = arith.constant dense<0.000000e+00> : vector<2x8x8xf32>
    %118 = tpu.matmul %115, %116, %cst_52 {dimension_numbers = #tpu.dot_dimension_numbers<[2], [2], [1], [1], [0, 0, 0, 1, 1, 1], [0], [0]>} : vector<2x8x8xf32>, vector<2x8x8xf32>, vector<2x8x8xf32> -> vector<2x8x8xf32>
    "tpu.trace_stop"() : () -> ()
    %119 = vector.shape_cast %9 : vector<1x8xf32> to vector<1x1x8xf32>
    %120 = vector.broadcast %119 : vector<1x1x8xf32> to vector<2x8x8xf32>
    %121 = arith.addf %118, %120 : vector<2x8x8xf32>
    %cst_53 = arith.constant dense<0xFF800000> : vector<2x8xf32>
    %122 = vector.multi_reduction <maximumf>, %121, %cst_53 [2] : vector<2x8x8xf32> to vector<2x8xf32>
    %123 = vector.shape_cast %122 : vector<2x8xf32> to vector<2x8x1xf32>
    %124 = vector.broadcast %123 : vector<2x8x1xf32> to vector<2x8x8xf32>
    %125 = arith.subf %121, %124 : vector<2x8x8xf32>
    %126 = math.exp %125 : vector<2x8x8xf32>
    %cst_54 = arith.constant dense<0.000000e+00> : vector<2x8xf32>
    %127 = vector.multi_reduction <add>, %126, %cst_54 [2] : vector<2x8x8xf32> to vector<2x8xf32>
    %128 = vector.shape_cast %127 : vector<2x8xf32> to vector<2x8x1xf32>
    %129 = tpu.reciprocal %128 {approx = true} : vector<2x8x1xf32> -> vector<2x8x1xf32>
    %130 = vector.broadcast %129 : vector<2x8x1xf32> to vector<2x8x8xf32>
    %131 = arith.mulf %126, %130 : vector<2x8x8xf32>
    "tpu.trace_start"() <{level = 10 : i32, message = "bst,btd->bsd"}> : () -> ()
    %cst_55 = arith.constant dense<0.000000e+00> : vector<2x8x8xf32>
    %132 = tpu.matmul %131, %117, %cst_55 {dimension_numbers = #tpu.dot_dimension_numbers<[2], [1], [1], [2], [0, 0, 0, 1, 1, 2], [0], [0]>} : vector<2x8x8xf32>, vector<2x8x8xf32>, vector<2x8x8xf32> -> vector<2x8x8xf32>
    "tpu.trace_stop"() : () -> ()
    %133 = tpu.concatenate %72, %92, %112, %132 in 2 : vector<2x8x8xf32>, vector<2x8x8xf32>, vector<2x8x8xf32>, vector<2x8x8xf32> -> vector<2x8x32xf32>
    %134 = vector.shape_cast %133 : vector<2x8x32xf32> to vector<16x32xf32>
    %135 = arith.truncf %134 : vector<16x32xf32> to vector<16x32xbf16>
    %c0_56 = arith.constant 0 : index
    %c0_57 = arith.constant 0 : index
    %c0_58 = arith.constant 0 : index
    %136 = vector.load %arg8[%c0_56, %c0_57, %c0_58] : memref<1x32x32xbf16, #tpu.memory_space<vmem>>, vector<1x32x32xbf16>
    %137 = vector.shape_cast %136 : vector<1x32x32xbf16> to vector<32x32xbf16>
    %cst_59 = arith.constant dense<0.000000e+00> : vector<16x32xf32>
    %138 = tpu.matmul %135, %137, %cst_59 {dimension_numbers = #tpu.dot_dimension_numbers<[1], [0], [0], [1], [0, 0, 1, 1], [], []>} : vector<16x32xbf16>, vector<32x32xbf16>, vector<16x32xf32> -> vector<16x32xf32>
    %139 = arith.addf %3, %138 : vector<16x32xf32>
    %140 = vector.broadcast %21 : vector<1x32xf32> to vector<16x32xf32>
    %141 = arith.addf %139, %140 : vector<16x32xf32>
    %cst_60 = arith.constant dense<0.000000e+00> : vector<16xf32>
    %142 = vector.multi_reduction <add>, %141, %cst_60 [1] : vector<16x32xf32> to vector<16xf32>
    %143 = vector.shape_cast %142 : vector<16xf32> to vector<16x1xf32>
    %cst_61 = arith.constant 3.200000e+01 : f32
    %144 = vector.broadcast %cst_61 : f32 to vector<16x1xf32>
    %145 = arith.divf %143, %144 : vector<16x1xf32>
    %146 = vector.broadcast %145 : vector<16x1xf32> to vector<16x32xf32>
    %147 = arith.subf %141, %146 : vector<16x32xf32>
    %148 = arith.mulf %147, %147 : vector<16x32xf32>
    %cst_62 = arith.constant dense<0.000000e+00> : vector<16xf32>
    %149 = vector.multi_reduction <add>, %148, %cst_62 [1] : vector<16x32xf32> to vector<16xf32>
    %150 = vector.shape_cast %149 : vector<16xf32> to vector<16x1xf32>
    %cst_63 = arith.constant 3.200000e+01 : f32
    %151 = vector.broadcast %cst_63 : f32 to vector<16x1xf32>
    %152 = arith.divf %150, %151 : vector<16x1xf32>
    %cst_64 = arith.constant 9.99999997E-7 : f32
    %153 = vector.broadcast %cst_64 : f32 to vector<16x1xf32>
    %154 = arith.addf %152, %153 : vector<16x1xf32>
    %155 = math.rsqrt %154 : vector<16x1xf32>
    %156 = vector.broadcast %155 : vector<16x1xf32> to vector<16x32xf32>
    %157 = arith.mulf %147, %156 : vector<16x32xf32>
    %158 = vector.broadcast %15 : vector<1x32xf32> to vector<16x32xf32>
    %159 = arith.mulf %157, %158 : vector<16x32xf32>
    %160 = vector.broadcast %17 : vector<1x32xf32> to vector<16x32xf32>
    %161 = arith.addf %159, %160 : vector<16x32xf32>
    %162 = arith.truncf %161 : vector<16x32xf32> to vector<16x32xbf16>
    %c0_65 = arith.constant 0 : index
    %c0_66 = arith.constant 0 : index
    %c0_67 = arith.constant 0 : index
    %163 = vector.load %arg12[%c0_65, %c0_66, %c0_67] : memref<1x32x128xbf16, #tpu.memory_space<vmem>>, vector<1x32x128xbf16>
    %164 = vector.shape_cast %163 : vector<1x32x128xbf16> to vector<32x128xbf16>
    %cst_68 = arith.constant dense<0.000000e+00> : vector<16x128xf32>
    %165 = tpu.matmul %162, %164, %cst_68 {dimension_numbers = #tpu.dot_dimension_numbers<[1], [0], [0], [1], [0, 0, 1, 1], [], []>} : vector<16x32xbf16>, vector<32x128xbf16>, vector<16x128xf32> -> vector<16x128xf32>
    %166 = vector.broadcast %23 : vector<1x128xf32> to vector<16x128xf32>
    %167 = arith.addf %165, %166 : vector<16x128xf32>
    %cst_69 = arith.constant 5.000000e-01 : f32
    %168 = vector.broadcast %cst_69 : f32 to vector<16x128xf32>
    %169 = arith.mulf %168, %167 : vector<16x128xf32>
    %cst_70 = arith.constant 4.471500e-02 : f32
    %170 = vector.broadcast %cst_70 : f32 to vector<16x128xf32>
    %171 = arith.mulf %170, %167 : vector<16x128xf32>
    %172 = arith.mulf %171, %167 : vector<16x128xf32>
    %173 = arith.mulf %172, %167 : vector<16x128xf32>
    %174 = arith.addf %167, %173 : vector<16x128xf32>
    %cst_71 = arith.constant 0.797884583 : f32
    %175 = vector.broadcast %cst_71 : f32 to vector<16x128xf32>
    %176 = arith.mulf %175, %174 : vector<16x128xf32>
    %177 = math.tanh %176 : vector<16x128xf32>
    %cst_72 = arith.constant 1.000000e+00 : f32
    %178 = vector.broadcast %cst_72 : f32 to vector<16x128xf32>
    %179 = arith.addf %178, %177 : vector<16x128xf32>
    %180 = arith.mulf %169, %179 : vector<16x128xf32>
    %181 = arith.truncf %180 : vector<16x128xf32> to vector<16x128xbf16>
    %c0_73 = arith.constant 0 : index
    %c0_74 = arith.constant 0 : index
    %c0_75 = arith.constant 0 : index
    %182 = vector.load %arg14[%c0_73, %c0_74, %c0_75] : memref<1x128x32xbf16, #tpu.memory_space<vmem>>, vector<1x128x32xbf16>
    %183 = vector.shape_cast %182 : vector<1x128x32xbf16> to vector<128x32xbf16>
    %cst_76 = arith.constant dense<0.000000e+00> : vector<16x32xf32>
    %184 = tpu.matmul %181, %183, %cst_76 {dimension_numbers = #tpu.dot_dimension_numbers<[1], [0], [0], [1], [0, 0, 1, 1], [], []>} : vector<16x128xbf16>, vector<128x32xbf16>, vector<16x32xf32> -> vector<16x32xf32>
    %185 = arith.addf %141, %184 : vector<16x32xf32>
    %186 = vector.broadcast %25 : vector<1x32xf32> to vector<16x32xf32>
    %187 = arith.addf %185, %186 : vector<16x32xf32>
    %c0_77 = arith.constant 0 : index
    %c0_78 = arith.constant 0 : index
    %188 = vector.load %arg17[%c0_77, %c0_78] : memref<16x32xf32, #tpu.memory_space<vmem>>, vector<16x32xf32>
    tpu.vector_store %arg17[%c0_77, %c0_78], %187 {strides = array<i32>} : memref<16x32xf32, #tpu.memory_space<vmem>>, vector<16x32xf32>,
    %c1_i32 = arith.constant 1 : i32
    %189 = arith.cmpi eq, %arg0, %c1_i32 : i32
    %190 = arith.extui %189 : i1 to i32
    %c0_i32_79 = arith.constant 0 : i32
    %191 = arith.cmpi ne, %190, %c0_i32_79 : i32
    scf.if %191 {
      %192 = vector.shape_cast %187 : vector<16x32xf32> to vector<2x8x32xf32>
      %193 = vector.extract_strided_slice %192 {offsets = [0, 0, 0], sizes = [2, 1, 32], strides = [1, 1, 1]} : vector<2x8x32xf32> to vector<2x1x32xf32>
      %194 = vector.shape_cast %193 : vector<2x1x32xf32> to vector<2x32xf32>
      %c0_80 = arith.constant 0 : index
      %c0_81 = arith.constant 0 : index
      %195 = vector.load %arg16[%c0_80, %c0_81] : memref<2x32xf32, #tpu.memory_space<vmem>>, vector<2x32xf32>
      tpu.vector_store %arg16[%c0_80, %c0_81], %194 {strides = array<i32>} : memref<2x32xf32, #tpu.memory_space<vmem>>, vector<2x32xf32>,
    } else {
    }
    return
  }
  func.func @transform_0(%arg0: i32) -> (i32, i32) {
    %c0_i32 = arith.constant 0 : i32
    %c0_i32_0 = arith.constant 0 : i32
    %c0_i32_1 = arith.constant 0 : i32
    return %c0_i32, %c0_i32_0 : i32, i32
  }
  func.func @transform_1(%arg0: i32) -> (i32, i32) {
    %c0_i32 = arith.constant 0 : i32
    %c0_i32_0 = arith.constant 0 : i32
    %c0_i32_1 = arith.constant 0 : i32
    return %c0_i32, %c0_i32_0 : i32, i32
  }
  func.func @transform_2(%arg0: i32) -> (i32, i32) {
    %c0_i32 = arith.constant 0 : i32
    %c0_i32_0 = arith.constant 0 : i32
    %c0_i32_1 = arith.constant 0 : i32
    return %c0_i32, %c0_i32_0 : i32, i32
  }
  func.func @transform_3(%arg0: i32) -> (i32, i32, i32) {
    %c0_i32 = arith.constant 0 : i32
    %c0_i32_0 = arith.constant 0 : i32
    %c0_i32_1 = arith.constant 0 : i32
    return %arg0, %c0_i32, %c0_i32_0 : i32, i32, i32
  }
  func.func @transform_4(%arg0: i32) -> (i32, i32, i32) {
    %c0_i32 = arith.constant 0 : i32
    %c0_i32_0 = arith.constant 0 : i32
    %c0_i32_1 = arith.constant 0 : i32
    return %arg0, %c0_i32, %c0_i32_0 : i32, i32, i32
  }
  func.func @transform_5(%arg0: i32) -> (i32, i32, i32) {
    %c0_i32 = arith.constant 0 : i32
    %c0_i32_0 = arith.constant 0 : i32
    %c0_i32_1 = arith.constant 0 : i32
    return %arg0, %c0_i32, %c0_i32_0 : i32, i32, i32
  }
  func.func @transform_6(%arg0: i32) -> (i32, i32, i32) {
    %c0_i32 = arith.constant 0 : i32
    %c0_i32_0 = arith.constant 0 : i32
    %c0_i32_1 = arith.constant 0 : i32
    return %arg0, %c0_i32, %c0_i32_0 : i32, i32, i32
  }
  func.func @transform_7(%arg0: i32) -> (i32, i32, i32) {
    %c0_i32 = arith.constant 0 : i32
    %c0_i32_0 = arith.constant 0 : i32
    %c0_i32_1 = arith.constant 0 : i32
    return %arg0, %c0_i32, %c0_i32_0 : i32, i32, i32
  }
  func.func @transform_8(%arg0: i32) -> (i32, i32, i32) {
    %c0_i32 = arith.constant 0 : i32
    %c0_i32_0 = arith.constant 0 : i32
    %c0_i32_1 = arith.constant 0 : i32
    return %arg0, %c0_i32, %c0_i32_0 : i32, i32, i32
  }
  func.func @transform_9(%arg0: i32) -> (i32, i32, i32) {
    %c0_i32 = arith.constant 0 : i32
    %c0_i32_0 = arith.constant 0 : i32
    %c0_i32_1 = arith.constant 0 : i32
    return %arg0, %c0_i32, %c0_i32_0 : i32, i32, i32
  }
  func.func @transform_10(%arg0: i32) -> (i32, i32, i32) {
    %c0_i32 = arith.constant 0 : i32
    %c0_i32_0 = arith.constant 0 : i32
    %c0_i32_1 = arith.constant 0 : i32
    return %arg0, %c0_i32, %c0_i32_0 : i32, i32, i32
  }
  func.func @transform_11(%arg0: i32) -> (i32, i32, i32) {
    %c0_i32 = arith.constant 0 : i32
    %c0_i32_0 = arith.constant 0 : i32
    %c0_i32_1 = arith.constant 0 : i32
    return %arg0, %c0_i32, %c0_i32_0 : i32, i32, i32
  }
  func.func @transform_12(%arg0: i32) -> (i32, i32, i32) {
    %c0_i32 = arith.constant 0 : i32
    %c0_i32_0 = arith.constant 0 : i32
    %c0_i32_1 = arith.constant 0 : i32
    return %arg0, %c0_i32, %c0_i32_0 : i32, i32, i32
  }
  func.func @transform_13(%arg0: i32) -> (i32, i32, i32) {
    %c0_i32 = arith.constant 0 : i32
    %c0_i32_0 = arith.constant 0 : i32
    %c0_i32_1 = arith.constant 0 : i32
    return %arg0, %c0_i32, %c0_i32_0 : i32, i32, i32
  }
  func.func @transform_14(%arg0: i32) -> (i32, i32, i32) {
    %c0_i32 = arith.constant 0 : i32
    %c0_i32_0 = arith.constant 0 : i32
    %c0_i32_1 = arith.constant 0 : i32
    return %arg0, %c0_i32, %c0_i32_0 : i32, i32, i32
  }
  func.func @transform_15(%arg0: i32) -> (i32, i32) {
    %c0_i32 = arith.constant 0 : i32
    %c0_i32_0 = arith.constant 0 : i32
    %c0_i32_1 = arith.constant 0 : i32
    return %c0_i32, %c0_i32_0 : i32, i32
  }
}

</mosaic_0001>

<bundles_post_ra>
// kernel: vit_extractor_forward.1
= control target key start
LH: loop header
LB: loop body
LE: loop exit
PB: predicated region body
PF: predicated region fallthrough
CT: control target
= control target key end

     0   :  { %s4353_s0 = inlined_call_operand.vmem [shape: bf16[16,768], index: 0, kind: input, shape index: {}]   ;;  %s4354_s1 = inlined_call_operand.vmem [shape: bf16[768,32], index: 1, kind: input, shape index: {}]   ;;  %s4355_s2 = inlined_call_operand.vmem [shape: f32[16,32], index: 2, kind: input, shape index: {}]   ;;  %s4356_s3 = inlined_call_operand.vmem [shape: f32[2,1,32], index: 3, kind: input, shape index: {}]   ;;  %s4357_s4 = inlined_call_operand.vmem [shape: f32[2,1,32], index: 4, kind: input, shape index: {}]   ;;  %s4358_s5 = inlined_call_operand.vmem [shape: bf16[2,32,96], index: 5, kind: input, shape index: {}]   ;;  %s4359_s6 = inlined_call_operand.vmem [shape: f32[2,1,96], index: 6, kind: input, shape index: {}]   ;;  %s4360_s7 = inlined_call_operand.vmem [shape: bf16[2,32,32], index: 7, kind: input, shape index: {}]   ;;  %s4361_s8 = inlined_call_operand.vmem [shape: f32[2,1,32], index: 8, kind: input, shape index: {}]   ;;  %s4362_s9 = inlined_call_operand.vmem [shape: f32[2,1,32], index: 9, kind: input, shape index: {}]   ;;  %s4363_s10 = inlined_call_operand.vmem [shape: f32[2,1,32], index: 10, kind: input, shape index: {}]   ;;  %s4364_s11 = inlined_call_operand.vmem [shape: bf16[2,32,128], index: 11, kind: input, shape index: {}]   ;;  %s4365_s12 = inlined_call_operand.vmem [shape: f32[2,1,128], index: 12, kind: input, shape index: {}]   ;;  %s4366_s13 = inlined_call_operand.vmem [shape: bf16[2,128,32], index: 13, kind: input, shape index: {}]   ;;  %s4367_s14 = inlined_call_operand.vmem [shape: f32[2,1,32], index: 14, kind: input, shape index: {}]   ;;  %s4368_s15 = inlined_call_operand.hbm [shape: f32[2,32], index: 15, kind: output, shape index: {}]  }
   0x1   :  { %4372 = sst [smem:[#allocation8_spill]] %s4356_s3 }
   0x2   :  { %4373 = sst [smem:[#allocation9_spill]] %s4357_s4 }
   0x3   :  { %4374 = sst [smem:[#allocation10_spill]] %s4358_s5 }
   0x4   :  { %4375 = sst [smem:[#allocation11_spill]] %s4360_s7 }
   0x5   :  { %4376 = sst [smem:[#allocation12_spill]] %s4368_s15 }
   0x6   :  { %20 = vsyncpa [#allocation4], 0  ;;  %s3831_s18 = smov 0  }
   0x7 LB: > { %4377 = sst [smem:[#allocation6_spill]] %s3731_s18  ;;  %s3837_s19 = sadd.s32 4294967295, %s3731_s18   ;;  %s3731_s18 = sphi %s3831_s18, %s26_s18  }
   0x8   : > { %p3171_p0 = scmp.ge.s32.totalorder %s3731_s18, 1  ;;  %p527_p1 = scmp.lt.s32.totalorder %s3731_s18, 3 }
   0xa   : > { %p528_p2 = pnand %p3171_p0, %p527_p1 }
   0xc   : > { %531 = sbr.rel (%p528_p2) target bundleno = 4456 (0x1168), region = 80 }
  0x13   : > { %p609_p3 = scmp.lt.s32.totalorder %s3837_s19, 1  ;;  %s4380_s5 = sld [smem:[#allocation10_spill]] }
  0x14   : > { %s4381_s7 = sld [smem:[#allocation11_spill]]  ;;  %p3180_p4 = scmp.ne.s32.totalorder %s3837_s19, 0 }
  0x15   : > { %s3843_s20 = scalar_select %p609_p3, %s3837_s19, 1 }
  0x16   : > { %657 = sbr.rel (%p3180_p4) target bundleno = 307 (0x133), region = 84  ;;  %v3565_v0 = vld [vmem:[%s4354_s1 + $0x40] sm:$0xff] (!%p3180_p4)   ;;  %v3569_v4 = vld [vmem:[%s4354_s1 + $0x48] sm:$0xff] (!%p3180_p4)   ;;  %v3573_v8 = vld [vmem:[%s4354_s1 + $0x50] sm:$0xff] (!%p3180_p4)   ;;  %vm1203_vm0 = vcmask (!%p3180_p4), 261120  }
  0x17   : > { %s3289_s27 = sshll.u32 %s3843_s20, 4  ;;  %s633_s4 = scalar_lea.vmem %s4362_s9, %s3843_s20  ;;  %v3566_v1 = vld [vmem:[%s4354_s1] sm:$0xff] (!%p3180_p4)   ;;  %3293 = vmatprep.subr.bf16.mxu0 (!%p3180_p4), %v3565_v0  ;;  %v3570_v5 = vld [vmem:[%s4354_s1 + $0x8] sm:$0xff] (!%p3180_p4)   ;;  %v3574_v9 = vld [vmem:[%s4354_s1 + $0x10] sm:$0xff] (!%p3180_p4)  }
  0x18   : > { %s636_s30 = scalar_lea.vmem %s4363_s10, %s3843_s20  ;;  %s652_s28 = scalar_lea.vmem %s4367_s14, %s3843_s20  ;;  %v3567_v2 = vld [vmem:[%s4354_s1 + $0xc0] sm:$0xff] (!%p3180_p4)   ;;  %3294 = vmatpush3.bf16.msra.mxu0 (!%p3180_p4), %v3566_v1  ;;  %v3571_v6 = vld [vmem:[%s4354_s1 + $0xc8] sm:$0xff] (!%p3180_p4)   ;;  %v3575_v10 = vld [vmem:[%s4354_s1 + $0xd0] sm:$0xff] (!%p3180_p4)  }
  0x19   : > { %s3861_s21 = scalar_lea.vmem %s4380_s5, %s3289_s27  ;;  %s3883_s5 = scalar_lea.vmem %s4364_s11, %s3289_s27  ;;  %v3568_v3 = vld [vmem:[%s4354_s1 + $0x80] sm:$0xff] (!%p3180_p4)   ;;  %3315 = vmatprep.subr.bf16.mxu1 (!%p3180_p4), %v3567_v2  ;;  %3295 = vmatprep.subr.bf16.mxu0 (!%p3180_p4), %v3569_v4  ;;  %v3572_v7 = vld [vmem:[%s4354_s1 + $0x88] sm:$0xff] (!%p3180_p4)   ;;  %v3576_v11 = vld [vmem:[%s4354_s1 + $0x90] sm:$0xff] (!%p3180_p4)  }
  0x1a   : > { %s3866_s15 = scalar_lea.vmem %s4381_s7, %s3289_s27  ;;  %s644_s7 = scalar_lea.vmem %s4365_s12, %s3843_s20  ;;  %3316 = vmatpush3.bf16.msra.mxu1 (!%p3180_p4), %v3568_v3  ;;  %v3577_v12 = vld [vmem:[%s4354_s1 + $0x58] sm:$0xff] (!%p3180_p4)   ;;  %v3581_v16 = vld [vmem:[%s4354_s1 + $0x60] sm:$0xff] (!%p3180_p4)   ;;  %v3585_v20 = vld [vmem:[%s4354_s1 + $0x68] sm:$0xff] (!%p3180_p4)  }
  0x1b   : > { %4382 = sst [smem:[#allocation7_spill]] %s3866_s15  ;;  %s3292_s15 = sshll.u32 %s3843_s20, 6  ;;  %3317 = vmatprep.subr.bf16.mxu1 (!%p3180_p4), %v3571_v6  ;;  %v3578_v13 = vld [vmem:[%s4354_s1 + $0x18] sm:$0xff] (!%p3180_p4)   ;;  %v3582_v17 = vld [vmem:[%s4354_s1 + $0x20] sm:$0xff] (!%p3180_p4)   ;;  %v3586_v21 = vld [vmem:[%s4354_s1 + $0x28] sm:$0xff] (!%p3180_p4)  }
  0x1c   : > { %s3893_s24 = scalar_lea.vmem %s4366_s13, %s3292_s15  ;;  %3296 = vmatpush3.bf16.msra.mxu0 (!%p3180_p4), %v3570_v5  ;;  %v3579_v14 = vld [vmem:[%s4354_s1 + $0xd8] sm:$0xff] (!%p3180_p4)   ;;  %v3583_v18 = vld [vmem:[%s4354_s1 + $0xe0] sm:$0xff] (!%p3180_p4)   ;;  %v3587_v22 = vld [vmem:[%s4354_s1 + $0xe8] sm:$0xff] (!%p3180_p4)  }
  0x1d   : > { %3297 = vmatprep.subr.bf16.mxu0 %v3573_v8  ;;  %v3580_v15 = vld [vmem:[%s4354_s1 + $0x98] sm:$0xff]   ;;  %v3584_v19 = vld [vmem:[%s4354_s1 + $0xa0] sm:$0xff]   ;;  %v3588_v23 = vld [vmem:[%s4354_s1 + $0xa8] sm:$0xff]  }
  0x1e   : > { %3318 = vmatpush3.bf16.msra.mxu1 %v3572_v7  ;;  %v3589_v24 = vld [vmem:[%s4354_s1 + $0x70] sm:$0xff]   ;;  %v3593_v28 = vld [vmem:[%s4354_s1 + $0x78] sm:$0xff]   ;;  %v3600_v34 = vld [vmem:[%s4354_s1 + $0x140] sm:$0xff]  }
  0x1f   : > { %3319 = vmatprep.subr.bf16.mxu1 %v3575_v10  ;;  %v3590_v25 = vld [vmem:[%s4354_s1 + $0x30] sm:$0xff]   ;;  %v3594_v29 = vld [vmem:[%s4354_s1 + $0x38] sm:$0xff]   ;;  %v3601_v35 = vld [vmem:[%s4353_s0 + $0x8] ss:$24 sps:$4 sm:$0xff]  }
  0x20   : > { %3298 = vmatpush3.bf16.msra.mxu0 %v3574_v9  ;;  %v3591_v26 = vld [vmem:[%s4354_s1 + $0xf0] sm:$0xff]   ;;  %v3595_v30 = vld [vmem:[%s4354_s1 + $0xf8] sm:$0xff]   ;;  %v3603_v36 = vld [vmem:[%s4353_s0 + $0xc] ss:$24 sps:$4 sm:$0xff]  }
  0x21   : > { %3299 = vmatprep.subr.bf16.mxu0 %v3577_v12  ;;  %v3592_v27 = vld [vmem:[%s4354_s1 + $0xb0] sm:$0xff]   ;;  %v3596_v31 = vld [vmem:[%s4353_s0] ss:$24 sps:$4 sm:$0xff]   ;;  %v3598_v32 = vld [vmem:[%s4353_s0 + $0x4] ss:$24 sps:$4 sm:$0xff]   ;;  %1153 = vmatprep.mubr.bf16.mxu1 %v3603_v36 }
  0x22   : > { %3320 = vmatpush3.bf16.msra.mxu1 %v3576_v11  ;;  %v3599_v33 = vld [vmem:[%s4354_s1 + $0xb8] sm:$0xff]   ;;  %1112 = vmatprep.mubr.bf16.mxu0 %v3598_v32  ;;  %v3604_v37 = vld [vmem:[%s4354_s1 + $0x100] sm:$0xff]   ;;  %v3605_v38 = vld [vmem:[%s4354_s1 + $0x148] sm:$0xff]  }
  0x23   : > { %3321 = vmatprep.subr.bf16.mxu1 %v3579_v14  ;;  %v3606_v39 = vld [vmem:[%s4354_s1 + $0x108] sm:$0xff]   ;;  %v3607_v40 = vld [vmem:[%s4354_s1 + $0x150] sm:$0xff]   ;;  %v3609_v42 = vld [vmem:[%s4354_s1 + $0x158] sm:$0xff]  }
  0x24   : > { %3300 = vmatpush3.bf16.msra.mxu0 %v3578_v13  ;;  %v3608_v41 = vld [vmem:[%s4354_s1 + $0x110] sm:$0xff]   ;;  %v3610_v43 = vld [vmem:[%s4354_s1 + $0x118] sm:$0xff]   ;;  %v3611_v44 = vld [vmem:[%s4354_s1 + $0x160] sm:$0xff]  }
  0x25   : > { %3301 = vmatprep.subr.bf16.mxu0 %v3581_v16  ;;  %v3612_v45 = vld [vmem:[%s4354_s1 + $0x120] sm:$0xff]   ;;  %v3613_v46 = vld [vmem:[%s4354_s1 + $0x168] sm:$0xff]   ;;  %v3615_v49 = vld [vmem:[%s4354_s1 + $0x170] sm:$0xff]  }
  0x26   : > { %3322 = vmatpush3.bf16.msra.mxu1 %v3580_v15  ;;  %v3621_v47 = vld [vmem:[%s4353_s0 + $0x14] ss:$24 sps:$4 sm:$0xff]   ;;  %v3617_v51 = vld [vmem:[%s4354_s1 + $0x178] sm:$0xff]   ;;  %v3619_v53 = vld [vmem:[%s4353_s0 + $0x10] ss:$24 sps:$4 sm:$0xff]  }
  0x27   : > { %3323 = vmatprep.subr.bf16.mxu1 %v3583_v18  ;;  %v3614_v48 = vld [vmem:[%s4354_s1 + $0x128] sm:$0xff]   ;;  %v3616_v50 = vld [vmem:[%s4354_s1 + $0x130] sm:$0xff]   ;;  %v3618_v52 = vld [vmem:[%s4354_s1 + $0x138] sm:$0xff]  }
  0x28   : > { %3302 = vmatpush3.bf16.msra.mxu0 %v3582_v17  ;;  %v760_v55 = vld [vmem:[%s4355_s2] sm:$0xff]  ;;  %v761_v60 = vld [vmem:[%s4355_s2 + $0x8] sm:$0xff] }
  0x29   : > { %3303 = vmatprep.subr.bf16.mxu0 %v3585_v20 }
  0x2a   : > { %3324 = vmatpush3.bf16.msra.mxu1 %v3584_v19 }
  0x2b   : > { %3325 = vmatprep.subr.bf16.mxu1 %v3587_v22 }
  0x2c   : > { %3304 = vmatpush3.bf16.msra.mxu0 %v3586_v21 }
  0x2d   : > { %3305 = vmatprep.subr.bf16.mxu0 %v3589_v24 }
  0x2e   : > { %3326 = vmatpush3.bf16.msra.mxu1 %v3588_v23 }
  0x2f   : > { %3327 = vmatprep.subr.bf16.mxu1 %v3591_v26 }
  0x30   : > { %3306 = vmatpush3.bf16.msra.mxu0 %v3590_v25 }
  0x31   : > { %3307 = vmatprep.subr.bf16.mxu0 %v3593_v28 }
  0x32   : > { %3328 = vmatpush3.bf16.msra.mxu1 %v3592_v27 }
  0x33   : > { %3329 = vmatprep.subr.bf16.mxu1 %v3595_v30 }
  0x34   : > { %3308 = vmatpush3.bf16.msra.mxu0 %v3594_v29 }
  0x35   : > { %3337 = vmatprep.subr.bf16.mxu0 %v3600_v34 }
  0x36   : > { %3330 = vmatpush3.bf16.msra.mxu1 %v3599_v33 }
  0x37   : > { %1113 = vmatmul.mubr.bf16.vlgmr.msra.gmra.mrb[0].mxu0 %v3596_v31 }
  0x38   : > { %3338 = vmatpush3.bf16.msra.mxu0 %v3604_v37  ;;  %1194 = vmatprep.mubr.bf16.mxu0 %v3621_v47 }
  0x39   : > { %1154 = vmatmul.mubr.bf16.vlgmr.msra.gmra.mrb[0].mxu1 %v3601_v35  ;;  %3339 = vmatprep.subr.bf16.mxu0 %v3605_v38 }
  0x3c   : > { %3340 = vmatpush3.bf16.msra.mxu0 %v3606_v39 }
  0x3d   : > { %3341 = vmatprep.subr.bf16.mxu0 %v3607_v40 }
  0x40   : > { %3342 = vmatpush3.bf16.msra.mxu0 %v3608_v41 }
  0x41   : > { %3343 = vmatprep.subr.bf16.mxu0 %v3609_v42 }
  0x44   : > { %3344 = vmatpush3.bf16.msra.mxu0 %v3610_v43 }
  0x45   : > { %3345 = vmatprep.subr.bf16.mxu0 %v3611_v44 }
  0x48   : > { %3346 = vmatpush3.bf16.msra.mxu0 %v3612_v45 }
  0x49   : > { %3347 = vmatprep.subr.bf16.mxu0 %v3613_v46 }
  0x4c   : > { %3348 = vmatpush3.bf16.msra.mxu0 %v3614_v48 }
  0x4d   : > { %3349 = vmatprep.subr.bf16.mxu0 %v3615_v49 }
  0x50   : > { %3350 = vmatpush3.bf16.msra.mxu0 %v3616_v50 }
  0x51   : > { %3351 = vmatprep.subr.bf16.mxu0 %v3617_v51 }
  0x54   : > { %3352 = vmatpush3.bf16.msra.mxu0 %v3618_v52 }
  0x57   : > { %1195 = vmatmul.mubr.bf16.vlgmr.msra.gmra.mrb[4].mxu0 %v3619_v53 }
 0x10a   : > { %v3309_v54 = vpop.f32.mrb[0].mxu0 }
 0x10b   : > { %v3310_v56 = vpop.f32.mrb[1].mxu0 }
 0x10c   : > { %v3311_v57 = vadd.f32 %v3310_v56, %v3309_v54  ;;  %v3312_v58 = vpop.f32.mrb[2].mxu0  ;;  %v3331_v59 = vpop.f32.mrb[0].mxu1 }
 0x10d   : > { %v3313_v61 = vpop.f32.mrb[3].mxu0  ;;  %v3332_v0 = vpop.f32.mrb[1].mxu1 }
 0x10e   : > { %v1115_v62 = vadd.f32 %v3311_v57, %v760_v55  ;;  %v3314_v63 = vadd.f32 %v3313_v61, %v3312_v58  ;;  %v3333_v1 = vadd.f32 %v3332_v0, %v3331_v59  ;;  %v3334_v2 = vpop.f32.mrb[2].mxu1 }
 0x10f   : > { %v3335_v4 = vpop.f32.mrb[3].mxu1 }
 0x110   : > { %v1118_v3 = vadd.f32 %v3314_v63, %v761_v60  ;;  %v1156_v5 = vadd.f32 %v3333_v1, %v1115_v62  ;;  %v3336_v6 = vadd.f32 %v3335_v4, %v3334_v2 }
 0x112   : > { %v1159_v7 = vadd.f32 %v3336_v6, %v1118_v3 }
 0x12a   : > { %v3353_v8 = vpop.f32.mrb[4].mxu0 }
 0x12b   : > { %v3354_v9 = vpop.f32.mrb[5].mxu0 }
 0x12c   : > { %v3355_v10 = vadd.f32 %v3354_v9, %v3353_v8  ;;  %v3356_v11 = vpop.f32.mrb[6].mxu0 }
 0x12d   : > { %v3357_v12 = vpop.f32.mrb[7].mxu0 }
 0x12e   : > { %v1197_v13 = vadd.f32 %v3355_v10, %v1156_v5  ;;  %v3358_v14 = vadd.f32 %v3357_v12, %v3356_v11 }
 0x130   : > { %1204 = vst.msk [vmem:[#allocation2] sm:$0xff] %vm1203_vm0, %v1197_v13  ;;  %v1200_v15 = vadd.f32 %v3358_v14, %v1159_v7 }
 0x132   : > { %1205 = vst.msk [vmem:[#allocation2 + $0x8] sm:$0xff] %vm1203_vm0, %v1200_v15 }
 0x133 PF: > { %vm1220_vm1 = vcmask 261120   ;;  %v3637_v30 = vld [vmem:[%s3861_s21] sm:$0xff]   ;;  %v3733_v31 = vmov 0.0   ;;  %v3638_v32 = vld [vmem:[%s3861_s21 + $0x8] sm:$0xff]   ;;  %vm3734_vm2 = vmmov 0   ;;  %s4383_s17 = sld [smem:[#allocation8_spill]]  ;;  %s4387_s29 = scalar_lea.vmem %s4359_s6, %s3843_s20  ;;  %v1208_v61 = vlaneseq }
 0x134   : > { %3409 = vmatprep.subr.bf16.mxu0 %v3733_v31  ;;  %3422 = vmatprep.subr.mxu1 %v3733_v31  ;;  %s4385_s3 = sld [smem:[#allocation9_spill]]  ;;  %v3237_v50 = vld [vmem:[%s4387_s29] ss:$0 sm:$0xff]  ;;  %s3735_s27 = smov 96   ;;  %vm1336_vm3 = vcmask 64512   ;;  %vm2680_vm5 = vcmask 130048  }
 0x135   : > { %3410 = vmatpush3.bf16.msra.mxu0 %v3637_v30  ;;  %3413 = vmatprep.mubr.msk.bf16.mxu0 %vm3734_vm2, %v3733_v31  ;;  %v1209_v62 = vand.u32 127, %v1208_v61  ;;  %v3736_v63 = vmov -1e+09   ;;  %s3737_s21 = smov 64   ;;  %s3738_s16 = smov 88   ;;  %vm2683_vm6 = vcmask 195584  }
 0x136   : > { %3411 = vmatprep.subr.bf16.mxu0 %v3733_v31  ;;  %3424 = vmatprep.mubr.msk.f32.mxu1 %vm3734_vm2, %v3733_v31  ;;  %s3741_s22 = smov 80   ;;  %s3742_s15 = smov 112  }
 0x137   : > { %v4068_v16 = vld [vmem:[#allocation2] sm:$0xff]  ;;  %vm1210_vm4 = vcmp.lt.s32.totalorder %v1209_v62, 5  ;;  %s3745_s26 = smov 104   ;;  %s3746_s25 = smov 40  }
 0x138   : > { %v1221_v18 = vsel %vm1220_vm1, %v4068_v16, 0.0  ;;  %v4132_v0 = vsel %vm1210_vm4, 0.0, %v3736_v63  ;;  %s3747_s29 = smov 8   ;;  %p3284_p5 = scmp.ne.s32.totalorder %s3837_s19, 1 }
 0x139   : > { %v4070_v17 = vld [vmem:[#allocation2 + $0x8] sm:$0xff]  ;;  %1222 = vadd.xlane.f32.xlu0 %v1221_v18  ;;  %3412 = vmatpush3.bf16.msra.mxu0 %v3638_v32  ;;  %s4384_s18 = scalar_lea.vmem %s4383_s17, %s3843_s20  ;;  %s3739_s17 = smov 120   ;;  %vm3009_vm7 = vcmask (!%p3284_p5), 1041409   ;;  %vm3012_vm8 = vcmask (!%p3284_p5), 254976  }
 0x13a   : > { %v1224_v19 = vsel %vm1220_vm1, %v4070_v17, 0.0  ;;  %3417 = vmatprep.subr.mxu0 %v3733_v31  ;;  %v3235_v41 = vld [vmem:[%s4384_s18] ss:$0 sm:$0xff]  ;;  %s4386_s23 = scalar_lea.vmem %s4385_s3, %s3843_s20  ;;  %s3740_s18 = smov 56  }
 0x13b   : > { %v3236_v45 = vld [vmem:[%s4386_s23] ss:$0 sm:$0xff]  ;;  %s3743_s3 = smov 48   ;;  %s3744_s23 = smov 72  }
 0x13d   : > { %1225 = vadd.xlane.f32.xlu0 %v1224_v19 }
 0x1c6   : > { %v1223_v20 = vpop.xlane.xlu0 %1222 }
 0x1c7   : > { %v1228_v21 = vmul.f32 0.03125, %v1223_v20 }
 0x1c9   : > { %v1230_v22 = vsub.f32 %v4068_v16, %v1228_v21 }
 0x1ca   : > { %v1226_v23 = vpop.xlane.xlu0 %1225 }
 0x1cb   : > { %v1229_v24 = vmul.f32 0.03125, %v1226_v23  ;;  %v1232_v25 = vmul.f32 %v1230_v22, %v1230_v22 }
 0x1cd   : > { %v1231_v26 = vsub.f32 %v4070_v17, %v1229_v24  ;;  %v1234_v27 = vsel %vm1220_vm1, %v1232_v25, 0.0 }
 0x1ce   : > { %1235 = vadd.xlane.f32.xlu1 %v1234_v27 }
 0x1cf   : > { %v1233_v28 = vmul.f32 %v1231_v26, %v1231_v26 }
 0x1d1   : > { %v1237_v29 = vsel %vm1220_vm1, %v1233_v28, 0.0 }
 0x1d2   : > { %1238 = vadd.xlane.f32.xlu1 %v1237_v29 }
 0x25b   : > { %v1236_v33 = vpop.xlane.xlu1 %1235 }
 0x25c   : > { %v1240_v34 = vmul.f32 0.03125, %v1236_v33 }
 0x25e   : > { %v1242_v35 = vadd.f32 1e-06, %v1240_v34 }
 0x25f   : > { %v1239_v36 = vpop.xlane.xlu1 %1238 }
 0x260   : > { %3651 = vrsqrt.f32 %v1242_v35  ;;  %v1241_v37 = vmul.f32 0.03125, %v1239_v36 }
 0x262   : > { %v1243_v38 = vadd.f32 1e-06, %v1241_v37 }
 0x264   : > { %3653 = vrsqrt.f32 %v1243_v38 }
 0x26a   : > { %v3652_v39 = vpop.eup %3651 }
 0x26b   : > { %v1246_v40 = vmul.f32 %v3652_v39, %v1230_v22 }
 0x26d   : > { %v1254_v44 = vmul.f32 %v3235_v41, %v1246_v40 }
 0x26e   : > { %v3654_v42 = vpop.eup %3653 }
 0x26f   : > { %v1247_v43 = vmul.f32 %v3654_v42, %v1231_v26  ;;  %v1262_v47 = vadd.f32 %v3236_v45, %v1254_v44 }
 0x271   : > { %v1255_v46 = vmul.f32 %v3235_v41, %v1247_v43 }
 0x273   : > { %v1263_v48 = vadd.f32 %v3236_v45, %v1255_v46 }
 0x275   : > { %v1264_v49 = vpack.c.bf16 %v1263_v48, %v1262_v47 }
 0x277   : > { %3414 = vmatmul.mubr.msk.bf16.vlgmr.msra.gmra.mrb[0].mxu0 %vm1220_vm1, %v1264_v49 }
 0x278   : > { %3419 = vmatprep.mubr.msk.f32.mxu0 %vm3734_vm2, %v3733_v31 }
 0x34a   : > { %v1324_v51 = vpop.f32.mrb[0].mxu0 }
 0x34b   : > { %v4108_v52 = vadd.f32 %v3237_v50, %v1324_v51  ;;  %v3415_v53 = vpop.f32.mrb[1].mxu0 }
 0x34c   : > { %v1327_v54 = vpop.f32.mrb[2].mxu0 }
 0x34d   : > { %v4110_v55 = vadd.f32 %v3237_v50, %v1327_v54  ;;  %1334 = vrot.lane.b32.xlu0 %v4108_v52, %s3735_s27  ;;  %v3416_v56 = vpop.f32.mrb[3].mxu0  ;;  %v4116_v59 = vmul.f32 0.35355338, %v4108_v52 }
 0x34f   : > { %1413 = vrot.lane.b32.xlu1 %v4110_v55, %s3735_s27  ;;  %v4123_v60 = vmul.f32 0.35355338, %v4110_v55  ;;  %s3748_s27 = smov 16  }
 0x3bf   : > { %v1335_v57 = vpop.permute.xlu0 %1334 }
 0x3c0   : > { %3418 = vmatpush3.xpose.msk.msra.mxu0 %vm1336_vm3, %v1335_v57 }
 0x3c1   : > { %v1414_v58 = vpop.permute.xlu1 %1413  ;;  %3432 = vmatprep.subr.mxu0 %v3733_v31 }
 0x3c2   : > { %3423 = vmatpush3.xpose.msk.msra.mxu1 %vm1336_vm3, %v1414_v58 }
 0x3c3   : > { %3420 = vmatmul.mubr.msk.f32.vlgmr.msra.gmra.mrb[4].mxu0 %vm1336_vm3, %v4116_v59  ;;  %3427 = vmatprep.subr.mxu1 %v3733_v31 }
 0x3c4   : > { %3434 = vmatprep.mubr.msk.f32.mxu0 %vm3734_vm2, %v3733_v31 }
 0x3c5   : > { %3425 = vmatmul.mubr.msk.f32.vlgmr.msra.gmra.mrb[0].mxu1 %vm1336_vm3, %v4123_v60 }
 0x3c6   : > { %3429 = vmatprep.mubr.msk.f32.mxu1 %vm3734_vm2, %v3733_v31 }
 0x496   : > { %v1408_v1 = vpop.f32.mrb[4].mxu0 }
 0x497   : > { %v1409_v2 = vadd.f32 %v1408_v1, %v4132_v0  ;;  %v3421_v3 = vpop.f32.mrb[5].mxu0 }
 0x498   : > { %v1486_v4 = vpop.f32.mrb[0].mxu1 }
 0x499   : > { %v1487_v5 = vadd.f32 %v1486_v4, %v4132_v0  ;;  %v3426_v6 = vpop.f32.mrb[1].mxu1  ;;  %v1490_v7 = vsel %vm1336_vm3, %v1409_v2, -inf }
 0x49a   : > { %1491 = vmax.xlane.f32.xlu1 %v1490_v7 }
 0x49b   : > { %v1493_v8 = vsel %vm1336_vm3, %v1487_v5, -inf }
 0x49c   : > { %1494 = vmax.xlane.f32.xlu0 %v1493_v8 }
 0x4ab   : > { %1588 = vrot.lane.b32.xlu1 %v4110_v55, %s3737_s21 }
 0x4af   : > { %1666 = vrot.lane.b32.xlu1 %v4108_v52, %s3738_s16 }
 0x4b2   : > { %1512 = vrot.lane.b32.xlu0 %v4108_v52, %s3737_s21  ;;  %s4388_s21 = sld [smem:[#allocation7_spill]] }
 0x4b3   : > { %1744 = vrot.lane.b32.xlu1 %v4110_v55, %s3738_s16  ;;  %s3749_s16 = smov 24  }
 0x527   : > { %v1492_v9 = vpop.xlane.xlu1 %1491 }
 0x528   : > { %v1496_v10 = vsub.f32 %v1409_v2, %v1492_v9 }
 0x529   : > { %v1495_v11 = vpop.xlane.xlu0 %1494 }
 0x52a   : > { %v1498_v12 = vmul.f32 1.442695, %v1496_v10  ;;  %v1497_v13 = vsub.f32 %v1487_v5, %v1495_v11 }
 0x52b   : > { %v1589_v14 = vpop.permute.xlu1 %1588 }
 0x52c   : > { %3655 = vpow2.f32 %v1498_v12  ;;  %v1500_v15 = vmul.f32 1.442695, %v1497_v13  ;;  %3433 = vmatpush3.msra.mxu0 %v1589_v14 }
 0x52d   : > { %v1513_v18 = vpop.permute.xlu0 %1512  ;;  %3442 = vmatprep.subr.mxu0 %v3733_v31 }
 0x52e   : > { %3657 = vpow2.f32 %v1500_v15  ;;  %3428 = vmatpush3.msra.mxu1 %v1513_v18 }
 0x52f   : > { %3437 = vmatprep.subr.mxu1 %v3733_v31  ;;  %v1667_v23 = vpop.permute.xlu1 %1666 }
 0x533   : > { %v1745_v24 = vpop.permute.xlu1 %1744 }
 0x536   : > { %v3656_v19 = vpop.eup %3655 }
 0x537   : > { %v1502_v20 = vsel %vm1336_vm3, %v3656_v19, 0.0 }
 0x538   : > { %v3658_v21 = vpop.eup %3657  ;;  %1503 = vadd.xlane.f32.xlu0 %v1502_v20 }
 0x539   : > { %v1505_v22 = vsel %vm1336_vm3, %v3658_v21, 0.0 }
 0x53a   : > { %1506 = vadd.xlane.f32.xlu1 %v1505_v22 }
 0x54b   : > { %1742 = vrot.lane.b32.xlu1 %v4123_v60, %s3739_s17 }
 0x54e   : > { %1664 = vrot.lane.b32.xlu0 %v4116_v59, %s3739_s17 }
 0x5c5   : > { %v1504_v25 = vpop.xlane.xlu0 %1503 }
 0x5c6   : > { %3659 = vrcp.f32 %v1504_v25 }
 0x5c7   : > { %v1507_v26 = vpop.xlane.xlu1 %1506 }
 0x5c8   : > { %3661 = vrcp.f32 %v1507_v26 }
 0x5c9   : > { %v1665_v32 = vpop.permute.xlu0 %1664 }
 0x5cb   : > { %v1743_v33 = vpop.permute.xlu1 %1742 }
 0x5d0   : > { %v3660_v27 = vpop.eup %3659 }
 0x5d1   : > { %v1510_v28 = vmul.f32 %v3660_v27, %v3656_v19 }
 0x5d2   : > { %v3662_v29 = vpop.eup %3661 }
 0x5d3   : > { %v1511_v30 = vmul.f32 %v3662_v29, %v3658_v21  ;;  %3430 = vmatmul.mubr.msk.f32.vlgmr.msra.gmra.mrb[2].mxu1 %vm1336_vm3, %v1510_v28 }
 0x5d4   : > { %3438 = vmatpush3.xpose.msk.msra.mxu1 %vm1336_vm3, %v1667_v23  ;;  %3439 = vmatprep.mubr.msk.f32.mxu1 %vm3734_vm2, %v3733_v31 }
 0x5d5   : > { %3435 = vmatmul.mubr.msk.f32.vlgmr.msra.gmra.mrb[6].mxu0 %vm1336_vm3, %v1511_v30  ;;  %3447 = vmatprep.subr.mxu1 %v3733_v31 }
 0x5d6   : > { %3443 = vmatpush3.xpose.msk.msra.mxu0 %vm1336_vm3, %v1745_v24  ;;  %3444 = vmatprep.mubr.msk.f32.mxu0 %vm3734_vm2, %v3733_v31 }
 0x5d7   : > { %3440 = vmatmul.mubr.msk.f32.vlgmr.msra.gmra.mrb[4].mxu1 %vm1336_vm3, %v1665_v32  ;;  %3452 = vmatprep.subr.mxu0 %v3733_v31 }
 0x5d8   : > { %3449 = vmatprep.mubr.msk.f32.mxu1 %vm3734_vm2, %v3733_v31 }
 0x5d9   : > { %3445 = vmatmul.mubr.msk.f32.vlgmr.msra.gmra.mrb[8].mxu0 %vm1336_vm3, %v1743_v33 }
 0x5da   : > { %3454 = vmatprep.mubr.msk.f32.mxu0 %vm3734_vm2, %v3733_v31 }
 0x6a6   : > { %v4164_v34 = vpop.f32.mrb[2].mxu1 }
 0x6a7   : > { %v3431_v35 = vpop.f32.mrb[3].mxu1 }
 0x6a8   : > { %v4166_v36 = vpop.f32.mrb[6].mxu0 }
 0x6a9   : > { %v3436_v37 = vpop.f32.mrb[7].mxu0 }
 0x6aa   : > { %v1738_v38 = vpop.f32.mrb[4].mxu1 }
 0x6ab   : > { %v1739_v39 = vadd.f32 %v1738_v38, %v4132_v0  ;;  %v3441_v40 = vpop.f32.mrb[5].mxu1 }
 0x6ac   : > { %v1816_v41 = vpop.f32.mrb[8].mxu0 }
 0x6ad   : > { %v1817_v42 = vadd.f32 %v1816_v41, %v4132_v0  ;;  %v3446_v43 = vpop.f32.mrb[9].mxu0  ;;  %v1820_v44 = vsel %vm1336_vm3, %v1739_v39, -inf }
 0x6ae   : > { %1821 = vmax.xlane.f32.xlu0 %v1820_v44 }
 0x6af   : > { %v1823_v45 = vsel %vm1336_vm3, %v1817_v42, -inf }
 0x6b0   : > { %1824 = vmax.xlane.f32.xlu1 %v1823_v45 }
 0x6c1   : > { %1918 = vrot.lane.b32.xlu1 %v4110_v55, %s3740_s18 }
 0x6c4   : > { %1842 = vrot.lane.b32.xlu0 %v4108_v52, %s3740_s18 }
 0x6c5   : > { %1996 = vrot.lane.b32.xlu1 %v4108_v52, %s3741_s22 }
 0x6c9   : > { %2074 = vrot.lane.b32.xlu1 %v4110_v55, %s3741_s22  ;;  %s4389_s22 = scalar_lea.vmem %s4361_s8, %s3843_s20 }
 0x6cd   : > { %2072 = vrot.lane.b32.xlu1 %v4123_v60, %s3742_s15 }
 0x73b   : > { %v1822_v46 = vpop.xlane.xlu0 %1821 }
 0x73c   : > { %v1826_v47 = vsub.f32 %v1739_v39, %v1822_v46 }
 0x73d   : > { %v1825_v48 = vpop.xlane.xlu1 %1824 }
 0x73e   : > { %v1828_v49 = vmul.f32 1.442695, %v1826_v47  ;;  %v1827_v50 = vsub.f32 %v1817_v42, %v1825_v48 }
 0x73f   : > { %v1843_v51 = vpop.permute.xlu0 %1842 }
 0x740   : > { %3663 = vpow2.f32 %v1828_v49  ;;  %v1830_v53 = vmul.f32 1.442695, %v1827_v50  ;;  %3448 = vmatpush3.msra.mxu1 %v1843_v51 }
 0x741   : > { %v1919_v54 = vpop.permute.xlu1 %1918  ;;  %3457 = vmatprep.subr.mxu1 %v3733_v31 }
 0x742   : > { %3665 = vpow2.f32 %v1830_v53  ;;  %3453 = vmatpush3.msra.mxu0 %v1919_v54 }
 0x743   : > { %3462 = vmatprep.subr.mxu0 %v3733_v31 }
 0x745   : > { %v1997_v1 = vpop.permute.xlu1 %1996 }
 0x749   : > { %v2075_v5 = vpop.permute.xlu1 %2074 }
 0x74a   : > { %v3664_v56 = vpop.eup %3663 }
 0x74b   : > { %v1832_v57 = vsel %vm1336_vm3, %v3664_v56, 0.0 }
 0x74c   : > { %v3666_v58 = vpop.eup %3665  ;;  %1833 = vadd.xlane.f32.xlu0 %v1832_v57 }
 0x74d   : > { %v1835_v61 = vsel %vm1336_vm3, %v3666_v58, 0.0  ;;  %v2073_v8 = vpop.permute.xlu1 %2072 }
 0x750   : > { %1836 = vadd.xlane.f32.xlu0 %v1835_v61 }
 0x766   : > { %1994 = vrot.lane.b32.xlu0 %v4116_v59, %s3742_s15 }
 0x7d9   : > { %v1834_v62 = vpop.xlane.xlu0 %1833 }
 0x7da   : > { %3667 = vrcp.f32 %v1834_v62 }
 0x7dd   : > { %v1837_v63 = vpop.xlane.xlu0 %1836 }
 0x7de   : > { %3669 = vrcp.f32 %v1837_v63 }
 0x7e1   : > { %v1995_v7 = vpop.permute.xlu0 %1994 }
 0x7e4   : > { %v3668_v2 = vpop.eup %3667 }
 0x7e5   : > { %v1840_v3 = vmul.f32 %v3668_v2, %v3664_v56 }
 0x7e7   : > { %3450 = vmatmul.mubr.msk.f32.vlgmr.msra.gmra.mrb[6].mxu1 %vm1336_vm3, %v1840_v3 }
 0x7e8   : > { %v3670_v4 = vpop.eup %3669  ;;  %3458 = vmatpush3.xpose.msk.msra.mxu1 %vm1336_vm3, %v1997_v1  ;;  %3459 = vmatprep.mubr.msk.f32.mxu1 %vm3734_vm2, %v3733_v31 }
 0x7e9   : > { %v1841_v6 = vmul.f32 %v3670_v4, %v3666_v58  ;;  %3467 = vmatprep.subr.mxu1 %v3733_v31 }
 0x7eb   : > { %3455 = vmatmul.mubr.msk.f32.vlgmr.msra.gmra.mrb[10].mxu0 %vm1336_vm3, %v1841_v6  ;;  %3460 = vmatmul.mubr.msk.f32.vlgmr.msra.gmra.mrb[8].mxu1 %vm1336_vm3, %v1995_v7 }
 0x7ec   : > { %3463 = vmatpush3.xpose.msk.msra.mxu0 %vm1336_vm3, %v2075_v5  ;;  %3464 = vmatprep.mubr.msk.f32.mxu0 %vm3734_vm2, %v3733_v31 }
 0x7ed   : > { %3472 = vmatprep.subr.mxu0 %v3733_v31  ;;  %3469 = vmatprep.mubr.msk.f32.mxu1 %vm3734_vm2, %v3733_v31 }
 0x7ef   : > { %3465 = vmatmul.mubr.msk.f32.vlgmr.msra.gmra.mrb[12].mxu0 %vm1336_vm3, %v2073_v8 }
 0x7f0   : > { %3474 = vmatprep.mubr.msk.f32.mxu0 %vm3734_vm2, %v3733_v31 }
 0x8ba   : > { %v4198_v9 = vpop.f32.mrb[6].mxu1 }
 0x8bb   : > { %v3451_v10 = vpop.f32.mrb[7].mxu1 }
 0x8be   : > { %v4200_v11 = vpop.f32.mrb[10].mxu0  ;;  %v2068_v12 = vpop.f32.mrb[8].mxu1 }
 0x8bf   : > { %v3622_v13 = vpack.i.bf16 %v4200_v11, %v4198_v9  ;;  %v2069_v14 = vadd.f32 %v2068_v12, %v4132_v0  ;;  %v3456_v15 = vpop.f32.mrb[11].mxu0  ;;  %v3461_v18 = vpop.f32.mrb[9].mxu1 }
 0x8c1   : > { %v2150_v19 = vsel %vm1336_vm3, %v2069_v14, -inf }
 0x8c2   : > { %2151 = vmax.xlane.f32.xlu0 %v2150_v19  ;;  %v2146_v20 = vpop.f32.mrb[12].mxu0  ;;  %v3640_v19 = vld [vmem:[%s4388_s21 + $0x8] sm:$0xff]  }
 0x8c3   : > { %v2147_v21 = vadd.f32 %v2146_v20, %v4132_v0  ;;  %v3466_v22 = vpop.f32.mrb[13].mxu0 }
 0x8c5   : > { %v2153_v23 = vsel %vm1336_vm3, %v2147_v21, -inf }
 0x8c6   : > { %2154 = vmax.xlane.f32.xlu1 %v2153_v23 }
 0x8d7   : > { %2248 = vrot.lane.b32.xlu1 %v4110_v55, %s3743_s3 }
 0x8d8   : > { %2172 = vrot.lane.b32.xlu0 %v4108_v52, %s3743_s3 }
 0x8db   : > { %2326 = vrot.lane.b32.xlu1 %v4108_v52, %s3744_s23 }
 0x8df   : > { %2404 = vrot.lane.b32.xlu1 %v4110_v55, %s3744_s23 }
 0x8e3   : > { %2402 = vrot.lane.b32.xlu1 %v4123_v60, %s3745_s26 }
 0x94f   : > { %v2152_v24 = vpop.xlane.xlu0 %2151 }
 0x950   : > { %v2156_v25 = vsub.f32 %v2069_v14, %v2152_v24 }
 0x952   : > { %v2158_v26 = vmul.f32 1.442695, %v2156_v25 }
 0x953   : > { %v2173_v27 = vpop.permute.xlu0 %2172  ;;  %v2155_v28 = vpop.xlane.xlu1 %2154 }
 0x954   : > { %3671 = vpow2.f32 %v2158_v26  ;;  %v2157_v29 = vsub.f32 %v2147_v21, %v2155_v28  ;;  %3468 = vmatpush3.msra.mxu1 %v2173_v27 }
 0x955   : > { %3477 = vmatprep.subr.mxu1 %v3733_v31 }
 0x956   : > { %v2160_v30 = vmul.f32 1.442695, %v2157_v29 }
 0x957   : > { %v2249_v32 = vpop.permute.xlu1 %2248 }
 0x958   : > { %3673 = vpow2.f32 %v2160_v30  ;;  %3473 = vmatpush3.msra.mxu0 %v2249_v32 }
 0x959   : > { %3482 = vmatprep.subr.mxu0 %v3733_v31 }
 0x95b   : > { %v2327_v40 = vpop.permute.xlu1 %2326 }
 0x95e   : > { %v3672_v33 = vpop.eup %3671 }
 0x95f   : > { %v2162_v35 = vsel %vm1336_vm3, %v3672_v33, 0.0  ;;  %v2405_v44 = vpop.permute.xlu1 %2404 }
 0x960   : > { %2163 = vadd.xlane.f32.xlu0 %v2162_v35 }
 0x962   : > { %v3674_v60 = vpop.eup %3673 }
 0x963   : > { %v2165_v37 = vsel %vm1336_vm3, %v3674_v60, 0.0  ;;  %v2403_v46 = vpop.permute.xlu1 %2402 }
 0x964   : > { %2166 = vadd.xlane.f32.xlu0 %v2165_v37 }
 0x97a   : > { %2324 = vrot.lane.b32.xlu0 %v4116_v59, %s3745_s26 }
 0x9ed   : > { %v2164_v38 = vpop.xlane.xlu0 %2163 }
 0x9ee   : > { %3675 = vrcp.f32 %v2164_v38 }
 0x9f1   : > { %v2167_v39 = vpop.xlane.xlu0 %2166 }
 0x9f2   : > { %3677 = vrcp.f32 %v2167_v39 }
 0x9f5   : > { %v2325_v59 = vpop.permute.xlu0 %2324 }
 0x9f8   : > { %v3676_v41 = vpop.eup %3675 }
 0x9f9   : > { %v2170_v42 = vmul.f32 %v3676_v41, %v3672_v33 }
 0x9fb   : > { %3470 = vmatmul.mubr.msk.f32.vlgmr.msra.gmra.mrb[10].mxu1 %vm1336_vm3, %v2170_v42 }
 0x9fc   : > { %v3678_v43 = vpop.eup %3677  ;;  %3478 = vmatpush3.xpose.msk.msra.mxu1 %vm1336_vm3, %v2327_v40  ;;  %3479 = vmatprep.mubr.msk.f32.mxu1 %vm3734_vm2, %v3733_v31 }
 0x9fd   : > { %v2171_v45 = vmul.f32 %v3678_v43, %v3674_v60  ;;  %3487 = vmatprep.subr.mxu1 %v3733_v31 }
 0x9ff   : > { %3475 = vmatmul.mubr.msk.f32.vlgmr.msra.gmra.mrb[14].mxu0 %vm1336_vm3, %v2171_v45  ;;  %3480 = vmatmul.mubr.msk.f32.vlgmr.msra.gmra.mrb[12].mxu1 %vm1336_vm3, %v2325_v59 }
 0xa00   : > { %3483 = vmatpush3.xpose.msk.msra.mxu0 %vm1336_vm3, %v2405_v44  ;;  %3484 = vmatprep.mubr.msk.f32.mxu0 %vm3734_vm2, %v3733_v31 }
 0xa01   : > { %3492 = vmatprep.subr.mxu0 %v3733_v31  ;;  %3489 = vmatprep.mubr.msk.f32.mxu1 %vm3734_vm2, %v3733_v31 }
 0xa03   : > { %3485 = vmatmul.mubr.msk.f32.vlgmr.msra.gmra.mrb[16].mxu0 %vm1336_vm3, %v2403_v46 }
 0xa04   : > { %3494 = vmatprep.mubr.msk.f32.mxu0 %vm3734_vm2, %v3733_v31 }
 0xace   : > { %v2244_v47 = vpop.f32.mrb[10].mxu1 }
 0xacf   : > { %v3471_v48 = vpop.f32.mrb[11].mxu1 }
 0xad2   : > { %v2320_v49 = vpop.f32.mrb[14].mxu0  ;;  %v2398_v50 = vpop.f32.mrb[12].mxu1 }
 0xad3   : > { %v3627_v51 = vpack.i.bf16 %v2320_v49, %v2244_v47  ;;  %v2399_v53 = vadd.f32 %v2398_v50, %v4132_v0  ;;  %v3476_v54 = vpop.f32.mrb[15].mxu0  ;;  %v3481_v56 = vpop.f32.mrb[13].mxu1 }
 0xad5   : > { %v2480_v57 = vsel %vm1336_vm3, %v2399_v53, -inf }
 0xad6   : > { %2481 = vmax.xlane.f32.xlu0 %v2480_v57  ;;  %v2476_v58 = vpop.f32.mrb[16].mxu0 }
 0xad7   : > { %v2477_v61 = vadd.f32 %v2476_v58, %v4132_v0  ;;  %v3486_v62 = vpop.f32.mrb[17].mxu0 }
 0xad9   : > { %v2483_v63 = vsel %vm1336_vm3, %v2477_v61, -inf }
 0xada   : > { %2484 = vmax.xlane.f32.xlu1 %v2483_v63  ;;  %v3641_v63 = vld [vmem:[%s3883_s5] sm:$0xff]  }
 0xaeb   : > { %2578 = vrot.lane.b32.xlu1 %v4110_v55, %s3746_s25 }
 0xaef   : > { %3623 = vrot.lane.b32.xlu1 %v3622_v13, %s3747_s29 }
 0xaf3   : > { %3628 = vrot.lane.b32.xlu1 %v3627_v51, %s3748_s27 }
 0xb63   : > { %v2482_v1 = vpop.xlane.xlu0 %2481 }
 0xb64   : > { %v2486_v2 = vsub.f32 %v2399_v53, %v2482_v1  ;;  %v3642_v1 = vld [vmem:[%s3883_s5 + $0x8] sm:$0xff]  }
 0xb66   : > { %v2488_v3 = vmul.f32 1.442695, %v2486_v2 }
 0xb67   : > { %v2485_v4 = vpop.xlane.xlu1 %2484 }
 0xb68   : > { %3679 = vpow2.f32 %v2488_v3  ;;  %v2487_v0 = vsub.f32 %v2477_v61, %v2485_v4 }
 0xb6a   : > { %v2490_v5 = vmul.f32 1.442695, %v2487_v0 }
 0xb6b   : > { %v2579_v6 = vpop.permute.xlu1 %2578 }
 0xb6c   : > { %3681 = vpow2.f32 %v2490_v5  ;;  %3493 = vmatpush3.msra.mxu0 %v2579_v6 }
 0xb6d   : > { %3497 = vmatprep.subr.bf16.mxu0 %v3733_v31 }
 0xb6f   : > { %v3624_v25 = vpop.permute.xlu1 %3623 }
 0xb70   : > { %v3626_v27 = vunpack.i.h.bf16 %v3624_v25  ;;  %v3625_v28 = vunpack.i.l.bf16 %v3624_v25  ;;  %v3650_v25 = vld [vmem:[%s3893_s24 + $0x38] sm:$0xff]  }
 0xb72   : > { %v3680_v55 = vpop.eup %3679  ;;  %v2679_v33 = vsel %vm1336_vm3, %v4166_v36, %v3626_v27  ;;  %v2678_v35 = vsel %vm1336_vm3, %v4164_v34, %v3625_v28  ;;  %v3268_v36 = vld [vmem:[%s4389_s22] ss:$0 sm:$0xff] }
 0xb73   : > { %v2492_v7 = vsel %vm1336_vm3, %v3680_v55, 0.0  ;;  %v3629_v26 = vpop.permute.xlu1 %3628 }
 0xb74   : > { %2493 = vadd.xlane.f32.xlu0 %v2492_v7  ;;  %v3631_v29 = vunpack.i.h.bf16 %v3629_v26  ;;  %v3630_v30 = vunpack.i.l.bf16 %v3629_v26  ;;  %v3271_v26 = vld [vmem:[%s644_s7] ss:$0 sm:$0xff] }
 0xb76   : > { %v3682_v8 = vpop.eup %3681  ;;  %v2681_v38 = vsel %vm2680_vm5, %v2678_v35, %v3630_v30  ;;  %v2682_v39 = vsel %vm2680_vm5, %v2679_v33, %v3631_v29 }
 0xb77   : > { %v2495_v9 = vsel %vm1336_vm3, %v3682_v8, 0.0 }
 0xb78   : > { %2496 = vadd.xlane.f32.xlu0 %v2495_v9 }
 0xb8e   : > { %2502 = vrot.lane.b32.xlu0 %v4108_v52, %s3746_s25  ;;  %v3639_v52 = vld [vmem:[%s4388_s21] sm:$0xff]  }
 0xc01   : > { %v2494_v10 = vpop.xlane.xlu0 %2493 }
 0xc02   : > { %3683 = vrcp.f32 %v2494_v10 }
 0xc05   : > { %v2497_v11 = vpop.xlane.xlu0 %2496 }
 0xc06   : > { %3685 = vrcp.f32 %v2497_v11 }
 0xc09   : > { %v2503_v12 = vpop.permute.xlu0 %2502 }
 0xc0a   : > { %3488 = vmatpush3.msra.mxu1 %v2503_v12  ;;  %v3270_v12 = vld [vmem:[%s636_s30] ss:$0 sm:$0xff] }
 0xc0b   : > { %3513 = vmatprep.subr.bf16.mxu1 %v3733_v31 }
 0xc0c   : > { %v3684_v13 = vpop.eup %3683 }
 0xc0d   : > { %v2500_v14 = vmul.f32 %v3684_v13, %v3680_v55 }
 0xc0f   : > { %3490 = vmatmul.mubr.msk.f32.vlgmr.msra.gmra.mrb[14].mxu1 %vm1336_vm3, %v2500_v14 }
 0xc10   : > { %v3686_v15 = vpop.eup %3685  ;;  %3529 = vmatprep.mubr.msk.bf16.mxu1 %vm3734_vm2, %v3733_v31 }
 0xc11   : > { %v2501_v18 = vmul.f32 %v3686_v15, %v3682_v8  ;;  %v3269_v8 = vld [vmem:[%s633_s4] ss:$0 sm:$0xff] }
 0xc13   : > { %3495 = vmatmul.mubr.msk.f32.vlgmr.msra.gmra.mrb[18].mxu0 %vm1336_vm3, %v2501_v18 }
 0xc14   : > { %3501 = vmatprep.mubr.msk.bf16.mxu0 %vm3734_vm2, %v3733_v31  ;;  %3498 = vmatpush3.bf16.msra.mxu0 %v3639_v52  ;;  %v3643_v52 = vld [vmem:[%s3893_s24] sm:$0xff]  }
 0xc15   : > { %3499 = vmatprep.subr.bf16.mxu0 %v3733_v31  ;;  %3514 = vmatpush3.bf16.msra.mxu1 %v3643_v52 }
 0xc16   : > { %3515 = vmatprep.subr.bf16.mxu1 %v3733_v31 }
 0xc18   : > { %3500 = vmatpush3.bf16.msra.mxu0 %v3640_v19  ;;  %v3644_v19 = vld [vmem:[%s3893_s24 + $0x8] sm:$0xff]  }
 0xc19   : > { %3505 = vmatprep.subr.bf16.mxu0 %v3733_v31  ;;  %3516 = vmatpush3.bf16.msra.mxu1 %v3644_v19 }
 0xc1a   : > { %3517 = vmatprep.subr.bf16.mxu1 %v3733_v31 }
 0xce2   : > { %v2574_v20 = vpop.f32.mrb[14].mxu1 }
 0xce3   : > { %v3491_v21 = vpop.f32.mrb[15].mxu1 }
 0xce4   : > { %v3646_v21 = vld [vmem:[%s3893_s24 + $0x18] sm:$0xff]  }
 0xce6   : > { %v2650_v22 = vpop.f32.mrb[18].mxu0 }
 0xce7   : > { %v3632_v23 = vpack.i.bf16 %v2650_v22, %v2574_v20  ;;  %v3496_v24 = vpop.f32.mrb[19].mxu0  ;;  %v3645_v20 = vld [vmem:[%s3893_s24 + $0x10] sm:$0xff]   ;;  %v3647_v22 = vld [vmem:[%s3893_s24 + $0x20] sm:$0xff]  }
 0xce8   : > { %3518 = vmatpush3.bf16.msra.mxu1 %v3645_v20  ;;  %v3649_v24 = vld [vmem:[%s3893_s24 + $0x30] sm:$0xff]  }
 0xce9   : > { %3633 = vrot.lane.b32.xlu0 %v3632_v23, %s3749_s16  ;;  %3519 = vmatprep.subr.bf16.mxu1 %v3733_v31  ;;  %v3648_v23 = vld [vmem:[%s3893_s24 + $0x28] sm:$0xff]  }
 0xcec   : > { %3520 = vmatpush3.bf16.msra.mxu1 %v3646_v21 }
 0xced   : > { %3521 = vmatprep.subr.bf16.mxu1 %v3733_v31 }
 0xcf0   : > { %3522 = vmatpush3.bf16.msra.mxu1 %v3647_v22 }
 0xcf1   : > { %3523 = vmatprep.subr.bf16.mxu1 %v3733_v31 }
 0xcf4   : > { %3524 = vmatpush3.bf16.msra.mxu1 %v3648_v23 }
 0xcf5   : > { %3525 = vmatprep.subr.bf16.mxu1 %v3733_v31 }
 0xcf8   : > { %3526 = vmatpush3.bf16.msra.mxu1 %v3649_v24 }
 0xcf9   : > { %3527 = vmatprep.subr.bf16.mxu1 %v3733_v31 }
 0xcfc   : > { %3528 = vmatpush3.bf16.msra.mxu1 %v3650_v25 }
 0xd5b   : > { %v3634_v32 = vpop.permute.xlu0 %3633 }
 0xd5c   : > { %v3636_v60 = vunpack.i.h.bf16 %v3634_v32  ;;  %v3635_v37 = vunpack.i.l.bf16 %v3634_v32 }
 0xd5e   : > { %v2685_v40 = vsel %vm2683_vm6, %v2682_v39, %v3636_v60  ;;  %v2684_v41 = vsel %vm2683_vm6, %v2681_v38, %v3635_v37 }
 0xd5f   : > { %v2686_v42 = vpack.c.bf16 %v2685_v40, %v2684_v41 }
 0xd61   : > { %3502 = vmatmul.mubr.msk.bf16.vlgmr.msra.gmra.mrb[20].mxu0 %vm1220_vm1, %v2686_v42 }
 0xd62   : > { %3509 = vmatprep.mubr.msk.bf16.mxu0 %vm3734_vm2, %v3733_v31  ;;  %3506 = vmatpush3.bf16.msra.mxu0 %v3641_v63 }
 0xd63   : > { %3507 = vmatprep.subr.bf16.mxu0 %v3733_v31 }
 0xd66   : > { %3508 = vmatpush3.bf16.msra.mxu0 %v3642_v1 }
 0xe34   : > { %v2740_v43 = vpop.f32.mrb[20].mxu0 }
 0xe35   : > { %v2747_v34 = vadd.f32 %v2740_v43, %v4068_v16  ;;  %v3503_v44 = vpop.f32.mrb[21].mxu0 }
 0xe36   : > { %v2743_v45 = vpop.f32.mrb[22].mxu0 }
 0xe37   : > { %v4270_v59 = vadd.f32 %v3268_v36, %v2747_v34  ;;  %v2748_v46 = vadd.f32 %v2743_v45, %v4070_v17  ;;  %v3504_v47 = vpop.f32.mrb[23].mxu0 }
 0xe39   : > { %v4273_v48 = vadd.f32 %v3268_v36, %v2748_v46  ;;  %v2757_v49 = vsel %vm1220_vm1, %v4270_v59, 0.0 }
 0xe3a   : > { %2758 = vadd.xlane.f32.xlu1 %v2757_v49 }
 0xe3b   : > { %v2760_v50 = vsel %vm1220_vm1, %v4273_v48, 0.0 }
 0xe3c   : > { %2761 = vadd.xlane.f32.xlu0 %v2760_v50 }
 0xec7   : > { %v2759_v16 = vpop.xlane.xlu1 %2758 }
 0xec8   : > { %v2763_v51 = vmul.f32 0.03125, %v2759_v16 }
 0xec9   : > { %v2762_v53 = vpop.xlane.xlu0 %2761 }
 0xeca   : > { %v2765_v54 = vsub.f32 %v4270_v59, %v2763_v51  ;;  %v2764_v56 = vmul.f32 0.03125, %v2762_v53  ;;  %v3283_v51 = vld [vmem:[%s652_s28] ss:$0 sm:$0xff] }
 0xecc   : > { %v2766_v17 = vsub.f32 %v4273_v48, %v2764_v56  ;;  %v2767_v57 = vmul.f32 %v2765_v54, %v2765_v54 }
 0xece   : > { %v2769_v58 = vsel %vm1220_vm1, %v2767_v57, 0.0  ;;  %v2768_v61 = vmul.f32 %v2766_v17, %v2766_v17 }
 0xecf   : > { %2770 = vadd.xlane.f32.xlu0 %v2769_v58 }
 0xed0   : > { %v2772_v62 = vsel %vm1220_vm1, %v2768_v61, 0.0 }
 0xed3   : > { %2773 = vadd.xlane.f32.xlu0 %v2772_v62 }
 0xf5c   : > { %v2771_v2 = vpop.xlane.xlu0 %2770 }
 0xf5d   : > { %v2775_v3 = vmul.f32 0.03125, %v2771_v2 }
 0xf5f   : > { %v2777_v4 = vadd.f32 1e-06, %v2775_v3 }
 0xf60   : > { %v2774_v0 = vpop.xlane.xlu0 %2773 }
 0xf61   : > { %3687 = vrsqrt.f32 %v2777_v4  ;;  %v2776_v5 = vmul.f32 0.03125, %v2774_v0 }
 0xf63   : > { %v2778_v6 = vadd.f32 1e-06, %v2776_v5 }
 0xf65   : > { %3689 = vrsqrt.f32 %v2778_v6 }
 0xf6b   : > { %v3688_v55 = vpop.eup %3687 }
 0xf6c   : > { %v2781_v7 = vmul.f32 %v3688_v55, %v2765_v54 }
 0xf6e   : > { %v2789_v10 = vmul.f32 %v3269_v8, %v2781_v7 }
 0xf6f   : > { %v3690_v9 = vpop.eup %3689 }
 0xf70   : > { %v2782_v11 = vmul.f32 %v3690_v9, %v2766_v17  ;;  %v2797_v14 = vadd.f32 %v3270_v12, %v2789_v10 }
 0xf72   : > { %v2790_v13 = vmul.f32 %v3269_v8, %v2782_v11 }
 0xf74   : > { %v2798_v15 = vadd.f32 %v3270_v12, %v2790_v13 }
 0xf76   : > { %v2799_v18 = vpack.c.bf16 %v2798_v15, %v2797_v14 }
 0xf78   : > { %3510 = vmatmul.mubr.msk.bf16.vlgmr.msra.gmra.mrb[24].mxu0 %vm1220_vm1, %v2799_v18 }
0x104b   : > { %v2859_v27 = vpop.f32.mrb[24].mxu0 }
0x104c   : > { %v2860_v28 = vadd.f32 %v3271_v26, %v2859_v27  ;;  %v3511_v29 = vpop.f32.mrb[25].mxu0 }
0x104d   : > { %v2862_v30 = vpop.f32.mrb[26].mxu0 }
0x104e   : > { %v2868_v32 = vmul.f32 0.044715, %v2860_v28  ;;  %v2863_v33 = vadd.f32 %v3271_v26, %v2862_v30  ;;  %v3512_v35 = vpop.f32.mrb[27].mxu0  ;;  %v2866_v45 = vmul.f32 0.5, %v2860_v28 }
0x1050   : > { %v2870_v60 = vmul.f32 %v2868_v32, %v2860_v28  ;;  %v2869_v37 = vmul.f32 0.044715, %v2863_v33  ;;  %v2867_v46 = vmul.f32 0.5, %v2863_v33 }
0x1052   : > { %v2872_v38 = vmul.f32 %v2870_v60, %v2860_v28  ;;  %v2871_v39 = vmul.f32 %v2869_v37, %v2863_v33 }
0x1054   : > { %v2874_v40 = vadd.f32 %v2872_v38, %v2860_v28  ;;  %v2873_v41 = vmul.f32 %v2871_v39, %v2863_v33 }
0x1056   : > { %v2876_v31 = vmul.f32 0.7978846, %v2874_v40  ;;  %v2875_v42 = vadd.f32 %v2873_v41, %v2863_v33 }
0x1058   : > { %3691 = vtanh.f32 %v2876_v31  ;;  %v2877_v36 = vmul.f32 0.7978846, %v2875_v42 }
0x105a   : > { %3693 = vtanh.f32 %v2877_v36 }
0x1062   : > { %v3692_v43 = vpop.eup %3691 }
0x1063   : > { %v2880_v34 = vadd.f32 1.0, %v3692_v43 }
0x1064   : > { %v3694_v44 = vpop.eup %3693 }
0x1065   : > { %v2881_v47 = vadd.f32 1.0, %v3694_v44  ;;  %v2882_v49 = vmul.f32 %v2880_v34, %v2866_v45 }
0x1067   : > { %v2883_v50 = vmul.f32 %v2881_v47, %v2867_v46 }
0x1069   : > { %v2884_v16 = vpack.c.bf16 %v2883_v50, %v2882_v49 }
0x106b   : > { %3530 = vmatmul.mubr.bf16.vlgmr.msra.gmra.mrb[16].mxu1 %v2884_v16 }
0x113e   : > { %v2983_v53 = vpop.f32.mrb[16].mxu1 }
0x113f   : > { %v2990_v54 = vadd.f32 %v2983_v53, %v4270_v59  ;;  %v3531_v56 = vpop.f32.mrb[17].mxu1  ;;  %3005 = sbr.rel (%p3284_p5) target bundleno = 4425 (0x1149), region = 88 }
0x1140   : > { %v2986_v17 = vpop.f32.mrb[18].mxu1 }
0x1141   : > { %v2998_v57 = vadd.f32 %v3283_v51, %v2990_v54  ;;  %v2991_v58 = vadd.f32 %v2986_v17, %v4273_v48  ;;  %v3532_v61 = vpop.f32.mrb[19].mxu1 }
0x1143   : > { %3000 = vst.msk [vmem:[#allocation2] sm:$0xff] %vm1220_vm1, %v2998_v57  ;;  %v2999_v62 = vadd.f32 %v3283_v51, %v2991_v58 }
0x1145   : > { %3001 = vst.msk [vmem:[#allocation2 + $0x8] sm:$0xff] %vm1220_vm1, %v2999_v62  ;;  %v3008_v63 = vrot.slane (!%p3284_p5), %v2999_v62, 7 }
0x1147   : > { %v3010_v1 = vsel %vm3009_vm7, %v3008_v63, %v2998_v57 }
0x1148   : > { %3013 = vst.msk [vmem:[#allocation3] sm:$0x3] %vm3012_vm8, %v3010_v1 }
0x1149 PF: > { %p3537_p6 = scmp.eq.s32.totalorder %s3837_s19, 1  ;;  %s3750_s20 = smov [#allocation3]  }
0x114a   : > { %s3021_s28 = sshll.u32 %s3750_s20, 4  ;;  %s3022_s28 = int_to_ptr.vmem [resolvable:$true] %s3021_s28 }
0x114b   : > { %s3695_s26 = scalar_lea.vmem %s3022_s28, 32  ;;  %p3702_p10 = scmp.lt.s32.totalorder %s3022_s28, %s3022_s28 }
0x114c   : > { %p3696_p7 = scmp.ne.s32.totalorder %s3022_s28, %s3695_s26  ;;  %p3703_p11 = scmp.lt.s32.totalorder %s3695_s26, %s3695_s26 }
0x114e   : > { %p3697_p8 = pnand %p3696_p7, %p3537_p6  ;;  %p3704_p12 = por %p3703_p11, %p3702_p10 }
0x1150   : > { %p3698_p9 = pneg %p3697_p8 }
0x1152   : > { %p3705_p13 = pnand %p3704_p12, %p3698_p9 }
0x1154   : > { %3708 = shalt.err (!%p3705_p13)
}
0x1155   : > { %s4390_s27 = sld [smem:[#allocation12_spill]] }
0x115b   : > { %s3709_s21 = scalar_lea.hbm %s4390_s27, 32 }
0x115c   : > { %p3710_p0 = scmp.ne.s32.totalorder %s4390_s27, %s3709_s21  ;;  %p3715_p3 = scmp.lt.u32.totalorder %s3709_s21, %s4390_s27 }
0x115e   : > { %p3711_p1 = pnand %p3710_p0, %p3537_p6 }
0x1160   : > { %p3712_p2 = pneg %p3711_p1 }
0x1162   : > { %p3717_p4 = pnand %p3715_p3, %p3712_p2 }
0x1164   : > { %3720 = shalt.err (!%p3717_p4)
}
0x1165   : > { %3534 = dma.vmem_to_hbm [thread:$0]  (%p3537_p6), %s3022_s28, 32, %s4390_s27, [#allocation4]  }
0x1166   : > { %3726 = dma.done.wait (%p3537_p6), [#allocation4], 32  }
0x1167   : > { %3728 = vsyncadd (%p3537_p6), [#allocation4], 4294967264 }
0x1168 PF: > { %s4391_s5 = sld [smem:[#allocation6_spill]] }
0x116e   : > { %s26_s18 = sadd.s32 1, %s4391_s5  }
0x116f   : > { %p23_p5 = scmp.ge.s32.totalorder %s26_s18, 4  }
0x1171   :  { %25 = sbr.rel (!%p23_p5) target bundleno = 7 (0x7), region = 148 }
0x1178   :  { %3034 = vsyncpa [#allocation4], 1 }
0x1179   :  { %3036 = vsyncpa [#allocation4 + $0x1], 1 }

</bundles_post_ra>
